<compile_context>
chip_gen: v5e
topology: v5e:2x2
jax: 0.10.0
libtpu: 0.0.40
codegen_flags: <defaults>
</compile_context>

<pallas_src>
import jax
import jax.numpy as jnp
from jax.experimental import pallas as pl
from jax.experimental.pallas import tpu as pltpu

LEAK = 0.2
Z_SIZE = 16
Z2 = 2 * Z_SIZE              # 32

# Geometry implied by nn.Linear(1250, 2*z): 50 * H * (W/8) = 1250.
B = 2                        # batch
CIN = 5                      # input channels
H = 5                        # height (untouched by the (1,kw) convs)
W = 40                       # input width: 40 -> 20 -> 10 -> 5
KW = 4                       # conv kernel width
W1OUT, W2OUT, W3OUT = 20, 10, 5
RP = 16                      # rows per width-position block (B*H = 10 -> 16)
CP = 128                     # padded channel count for the 100-channel layers
C4P = 64                     # padded channel count for the 50-channel layer
K1P = 32                     # padded K for conv1 (kw * CIN = 20 -> 32)
KFC_H = W3OUT * C4P          # per-height FC reduction width = 320


# ------------------------------ Pallas kernel ------------------------------ #
def _encoder_kernel(x1_ref, w1_ref, w23_ref, w4_ref, wfc_ref, b_ref, out_ref,
                    y1_ref, y2_ref, xs_ref):
    """Fused 4-conv + FC encoder.

    Row layout of activations: 16 rows per width position, row-within-block =
    h*B + b.  y1 blocks: [even widths 0,2..18 | ZERO | odd widths 1,3..19];
    y2 blocks: [even outputs 0,2..8 | ZERO | odd outputs 1,3..9]."""
    f32, bf16 = jnp.float32, jnp.bfloat16

    def lrelu(v):
        return jnp.maximum(v, LEAK * v)          # single vmul + vmax (f32 VPU)

    b1 = b_ref[0:1, :]
    b2 = b_ref[1:2, :]
    b3 = b_ref[2:3, :]
    b4 = b_ref[3:4, 0:C4P]
    bfc = b_ref[4:5, 0:Z2]

    # ---- conv1: two (160,32)@(32,128) matmuls (even widths, odd widths) -----
    w1 = w1_ref[...]
    y1_ref[0:160, :] = lrelu(
        jnp.dot(x1_ref[0:160, :], w1, preferred_element_type=f32) + b1
    ).astype(bf16)
    y1_ref[160:176, :] = jnp.zeros((RP, CP), bf16)       # conv width zero-pad
    y1_ref[176:336, :] = lrelu(
        jnp.dot(x1_ref[160:320, :], w1, preferred_element_type=f32) + b1
    ).astype(bf16)

    # ---- conv2: 4 accumulating slab matmuls (no im2col), two 80-row halves --
    # y1 block holding input width (2*wo-1+k) for output wo, tap k, starts at
    # block c2_base[k] + wo -> each tap's inputs are one contiguous slab.
    c2_base = (10, 0, 11, 1)
    for half in range(2):
        acc = None
        for k in range(KW):
            off = (c2_base[k] + W3OUT * half) * RP
            d = jnp.dot(y1_ref[off:off + 80, :],
                        w23_ref[k * CP:(k + 1) * CP, :],
                        preferred_element_type=f32)
            acc = d if acc is None else acc + d
        yv = lrelu(acc + b2).astype(bf16)                # outputs 5*half..5*half+4
        for j in range(5):                               # scatter into [even|Z|odd]
            wo = 5 * half + j
            dst = (wo // 2) if (wo % 2 == 0) else (6 + wo // 2)
            y2_ref[dst * RP:(dst + 1) * RP, :] = yv[j * RP:(j + 1) * RP, :]
    y2_ref[5 * RP:6 * RP, :] = jnp.zeros((RP, CP), bf16)  # conv width zero-pad

    # ---- conv3: 4 accumulating slab matmuls (no im2col) ---------------------
    c3_base = (5, 0, 6, 1)
    acc = None
    for k in range(KW):
        off = c3_base[k] * RP
        d = jnp.dot(y2_ref[off:off + 80, :],
                    w23_ref[(KW + k) * CP:(KW + k + 1) * CP, :],
                    preferred_element_type=f32)
        acc = d if acc is None else acc + d
    y3 = lrelu(acc + b3)                                 # (80,128) f32, widths 0..4

    # ---- conv4 (1x1): plain channel matmul, kept as a register value --------
    y4 = lrelu(jnp.dot(y3.astype(bf16), w4_ref[...],
                       preferred_element_type=f32) + b4)  # (80,64) f32

    # ---- flatten staging: 5 aligned (16,64) copies (no zero-init, no row ops)
    # xs[h*2+b, wo*64 + c] = y4 value at (b, c, h, wo)
    for wo in range(W3OUT):
        xs_ref[:, wo * C4P:(wo + 1) * C4P] = y4[wo * RP:(wo + 1) * RP, :]

    # ---- Linear(1250, 2*z): 5 accumulating (2,320)@(320,32) dots (one per h)
    acc_fc = None
    for h in range(H):
        lhs = xs_ref[2 * h:2 * h + 2, :].astype(bf16)    # rows (h,b=0),(h,b=1)
        d = jnp.dot(lhs, wfc_ref[h * KFC_H:(h + 1) * KFC_H, :],
                    preferred_element_type=f32)
        acc_fc = d if acc_fc is None else acc_fc + d
    yfc = acc_fc + bfc                                   # (2,32) = [mean | logvar]

    # ---- single lane-dense (8,128) output slab ------------------------------
    out_ref[...] = jnp.zeros((8, CP), f32)
    out_ref[0:B, 0:Z2] = yfc


def _encoder_pallas(x1, p):
    flops = 2 * (W1OUT * RP * K1P * CP                    # conv1
                 + (W2OUT * RP) * (KW * CP) * CP          # conv2
                 + (W3OUT * RP) * (KW * CP) * CP          # conv3
                 + (W3OUT * RP) * CP * C4P                # conv4
                 + B * (H * KFC_H) * Z2)                  # fc
    bytes_accessed = (2 * (x1.size + p["w1"].size + p["w23"].size
                           + p["w4"].size + p["wfc"].size)
                      + 4 * (p["b"].size + 8 * CP))
    vmem = pl.BlockSpec(memory_space=pltpu.MemorySpace.VMEM)
    return pl.pallas_call(
        _encoder_kernel,
        out_shape=jax.ShapeDtypeStruct((8, CP), jnp.float32),
        in_specs=[vmem] * 6,
        out_specs=vmem,
        scratch_shapes=[
            pltpu.VMEM((21 * RP, CP), jnp.bfloat16),      # y1 (336,128)
            pltpu.VMEM((11 * RP, CP), jnp.bfloat16),      # y2 (176,128)
            pltpu.VMEM((RP, W3OUT * C4P), jnp.float32),   # xs (16,320)
        ],
        cost_estimate=pl.CostEstimate(flops=flops, transcendentals=0,
                                      bytes_accessed=bytes_accessed),
    )(x1, p["w1"], p["w23"], p["w4"], p["wfc"], p["b"])


# ------------------------------ JAX glue ----------------------------------- #
def _build_x1(x):
    """im2col of the NCHW input for conv1 (kw strided slices + stack, no gather)
    in even-widths-first block order, row-within-block = h*B + b, bf16."""
    xp = jnp.pad(x, ((0, 0), (0, 0), (0, 0), (1, 1)))              # (B,C,H,42)
    taps = [xp[:, :, :, k:k + 2 * W1OUT:2] for k in range(KW)]     # (B,C,H,20)
    t = jnp.stack(taps, axis=1)                                    # (B,kw,C,H,20)
    t = jnp.transpose(t, (4, 3, 0, 1, 2))                          # (20,H,B,kw,C)
    t = t.reshape(W1OUT, B * H, KW * CIN)
    t = jnp.pad(t, ((0, 0), (0, RP - B * H), (0, K1P - KW * CIN)))  # (20,16,32)
    t = jnp.concatenate([t[0::2], t[1::2]], axis=0)                # even | odd
    return t.reshape(W1OUT * RP, K1P).astype(jnp.bfloat16)         # (320,32)


def prepare_encoder_params(p):
    """One-time weight re-layout / bf16 cast (outside the per-forward hot path)."""
    bf16 = jnp.bfloat16

    def conv_w_taps(w, cin_pad, cout_pad):
        co, ci, _, kw = w.shape
        wt = jnp.transpose(w[:, :, 0, :], (2, 1, 0))               # (kw, ci, co)
        wt = jnp.pad(wt, ((0, 0), (0, cin_pad - ci), (0, cout_pad - co)))
        return wt.reshape(kw * cin_pad, cout_pad)

    # conv1 K layout: kw-major / cin-minor over 20, then K padded 20->32.
    w1 = jnp.transpose(p["w1"][:, :, 0, :], (2, 1, 0)).reshape(KW * CIN, 100)
    w1 = jnp.pad(w1, ((0, K1P - KW * CIN), (0, CP - 100)))         # (32,128)
    w2 = conv_w_taps(p["w2"], CP, CP)                              # (512,128)
    w3 = conv_w_taps(p["w3"], CP, CP)                              # (512,128)
    w23 = jnp.concatenate([w2, w3], axis=0)                        # (1024,128)
    w4 = jnp.pad(p["w4"][:, :, 0, 0].T, ((0, CP - 100), (0, C4P - 50)))  # (128,64)

    # FC weight permuted to (h, w, c) feature order, c padded 50->64.
    wfc = p["wfc"].reshape(Z2, 50, H, W3OUT)                       # (z,c,h,w)
    wfc = jnp.transpose(wfc, (2, 3, 1, 0))                         # (h,w,c,z)
    wfc = jnp.pad(wfc, ((0, 0), (0, 0), (0, C4P - 50), (0, 0)))
    wfc = wfc.reshape(H * W3OUT * C4P, Z2)                         # (1600,32)

    # All biases in ONE (8,128) f32 array: rows b1,b2,b3,b4,bfc.
    biases = jnp.zeros((8, CP), jnp.float32)
    biases = biases.at[0, :100].set(p["b1"])
    biases = biases.at[1, :100].set(p["b2"])
    biases = biases.at[2, :100].set(p["b3"])
    biases = biases.at[3, :50].set(p["b4"])
    biases = biases.at[4, :Z2].set(p["bfc"])

    return {"w1": w1.astype(bf16), "w23": w23.astype(bf16),
            "w4": w4.astype(bf16), "wfc": wfc.astype(bf16), "b": biases}


@jax.jit
def encoder_forward(x, prepared):
    """x: (B, 5, 5, 40) NCHW -> (mean, log_var), each (B, Z_SIZE)."""
    out = _encoder_pallas(_build_x1(x), prepared)
    return out[0:B, 0:Z_SIZE], out[0:B, Z_SIZE:Z2]


# --------------------------- pure-JAX reference ----------------------------- #
def ref_forward(x, params):
    def conv(x, w, b, stride, pad):
        y = jax.lax.conv_general_dilated(
            x, w, window_strides=(1, stride), padding=((0, 0), (pad, pad)),
            dimension_numbers=("NCHW", "OIHW", "NCHW"))
        return y + b[None, :, None, None]

    lrelu = lambda v: jnp.where(v >= 0, v, LEAK * v)
    x = lrelu(conv(x, params["w1"], params["b1"], 2, 1))
    x = lrelu(conv(x, params["w2"], params["b2"], 2, 1))
    x = lrelu(conv(x, params["w3"], params["b3"], 2, 1))
    x = lrelu(conv(x, params["w4"], params["b4"], 1, 0))
    flat = x.reshape(x.shape[0], -1)
    y = flat @ params["wfc"].T + params["bfc"]
    half = y.shape[1] // 2
    return y[:, :half], y[:, half:]


# --------------------------------- main ------------------------------------- #
if __name__ == "__main__":
    key = jax.random.PRNGKey(0)
    ks = jax.random.split(key, 11)

    def init(k, shape, scale=0.1):
        return (scale * jax.random.normal(k, shape)).astype(jnp.float32)

    params = {
        "w1": init(ks[0], (100, 5, 1, 4)),
        "b1": init(ks[1], (100,)),
        "w2": init(ks[2], (100, 100, 1, 4)),
        "b2": init(ks[3], (100,)),
        "w3": init(ks[4], (100, 100, 1, 4)),
        "b3": init(ks[5], (100,)),
        "w4": init(ks[6], (50, 100, 1, 1)),
        "b4": init(ks[7], (50,)),
        "wfc": init(ks[8], (Z2, 1250)),      # nn.Linear(1250, 2*z)
        "bfc": init(ks[9], (Z2,)),
    }

    # Input (B, 5, 5, 40) NCHW: W 40 -> 20 -> 10 -> 5, flatten = 50*5*5 = 1250,
    # matching the module's nn.Linear(1250, ...).
    x = init(ks[10], (B, CIN, H, W), scale=1.0)

    prepared = prepare_encoder_params(params)        # one-time re-layout + bf16
    mean, log_var = encoder_forward(x, prepared)
    jax.block_until_ready((mean, log_var))

    r_mean, r_lv = ref_forward(x, params)
    assert mean.shape == (B, Z_SIZE) and log_var.shape == (B, Z_SIZE)
    # bf16 matmul operands with f32 accumulation -> slightly relaxed tolerance.
    assert jnp.allclose(mean, r_mean, atol=5e-2, rtol=5e-2)
    assert jnp.allclose(log_var, r_lv, atol=5e-2, rtol=5e-2)

    print("KERNEL_OK")
</pallas_src>

<mosaic_0001>
module attributes {stable_mosaic.version = 11 : i64} {
  func.func @_encoder_kernel(%arg0: memref<320x32xbf16, #tpu.memory_space<vmem>>, %arg1: memref<32x128xbf16, #tpu.memory_space<vmem>>, %arg2: memref<1024x128xbf16, #tpu.memory_space<vmem>>, %arg3: memref<128x64xbf16, #tpu.memory_space<vmem>>, %arg4: memref<1600x32xbf16, #tpu.memory_space<vmem>>, %arg5: memref<8x128xf32, #tpu.memory_space<vmem>>, %arg6: memref<8x128xf32, #tpu.memory_space<vmem>>, %arg7: memref<336x128xbf16, #tpu.memory_space<vmem>>, %arg8: memref<176x128xbf16, #tpu.memory_space<vmem>>, %arg9: memref<16x320xf32, #tpu.memory_space<vmem>>) attributes {dimension_semantics = [], scalar_prefetch = 0 : i64, scratch_operands = 3 : i64, tpu.core_type = #tpu.core_type<tc>} {
    %c0 = arith.constant 0 : index
    %c0_0 = arith.constant 0 : index
    %0 = vector.load %arg5[%c0, %c0_0] : memref<8x128xf32, #tpu.memory_space<vmem>>, vector<1x128xf32>
    %c1 = arith.constant 1 : index
    %c0_1 = arith.constant 0 : index
    %1 = vector.load %arg5[%c1, %c0_1] : memref<8x128xf32, #tpu.memory_space<vmem>>, vector<1x128xf32>
    %c2 = arith.constant 2 : index
    %c0_2 = arith.constant 0 : index
    %2 = vector.load %arg5[%c2, %c0_2] : memref<8x128xf32, #tpu.memory_space<vmem>>, vector<1x128xf32>
    %c3 = arith.constant 3 : index
    %c0_3 = arith.constant 0 : index
    %3 = vector.load %arg5[%c3, %c0_3] : memref<8x128xf32, #tpu.memory_space<vmem>>, vector<1x64xf32>
    %c4 = arith.constant 4 : index
    %c0_4 = arith.constant 0 : index
    %4 = vector.load %arg5[%c4, %c0_4] : memref<8x128xf32, #tpu.memory_space<vmem>>, vector<1x32xf32>
    %c0_5 = arith.constant 0 : index
    %c0_6 = arith.constant 0 : index
    %5 = vector.load %arg1[%c0_5, %c0_6] : memref<32x128xbf16, #tpu.memory_space<vmem>>, vector<32x128xbf16>
    %c0_7 = arith.constant 0 : index
    %c0_8 = arith.constant 0 : index
    %6 = vector.load %arg0[%c0_7, %c0_8] : memref<320x32xbf16, #tpu.memory_space<vmem>>, vector<160x32xbf16>
    %cst = arith.constant dense<0.000000e+00> : vector<160x128xf32>
    %7 = tpu.matmul %6, %5, %cst {dimension_numbers = #tpu.dot_dimension_numbers<[1], [0], [0], [1], [0, 0, 1, 1], [], []>} : vector<160x32xbf16>, vector<32x128xbf16>, vector<160x128xf32> -> vector<160x128xf32>
    %8 = vector.broadcast %0 : vector<1x128xf32> to vector<160x128xf32>
    %9 = arith.addf %7, %8 : vector<160x128xf32>
    %cst_9 = arith.constant 2.000000e-01 : f32
    %10 = vector.broadcast %cst_9 : f32 to vector<160x128xf32>
    %11 = arith.mulf %10, %9 : vector<160x128xf32>
    %12 = arith.maximumf %9, %11 : vector<160x128xf32>
    %13 = arith.truncf %12 : vector<160x128xf32> to vector<160x128xbf16>
    %c0_10 = arith.constant 0 : index
    %c0_11 = arith.constant 0 : index
    %14 = vector.load %arg7[%c0_10, %c0_11] : memref<336x128xbf16, #tpu.memory_space<vmem>>, vector<160x128xbf16>
    tpu.vector_store %arg7[%c0_10, %c0_11], %13 {strides = array<i32>} : memref<336x128xbf16, #tpu.memory_space<vmem>>, vector<160x128xbf16>,
    %cst_12 = arith.constant 0.000000e+00 : bf16
    %15 = vector.broadcast %cst_12 : bf16 to vector<16x128xbf16>
    %c160 = arith.constant 160 : index
    %c0_13 = arith.constant 0 : index
    %16 = vector.load %arg7[%c160, %c0_13] : memref<336x128xbf16, #tpu.memory_space<vmem>>, vector<16x128xbf16>
    tpu.vector_store %arg7[%c160, %c0_13], %15 {strides = array<i32>} : memref<336x128xbf16, #tpu.memory_space<vmem>>, vector<16x128xbf16>,
    %c160_14 = arith.constant 160 : index
    %c0_15 = arith.constant 0 : index
    %17 = vector.load %arg0[%c160_14, %c0_15] : memref<320x32xbf16, #tpu.memory_space<vmem>>, vector<160x32xbf16>
    %cst_16 = arith.constant dense<0.000000e+00> : vector<160x128xf32>
    %18 = tpu.matmul %17, %5, %cst_16 {dimension_numbers = #tpu.dot_dimension_numbers<[1], [0], [0], [1], [0, 0, 1, 1], [], []>} : vector<160x32xbf16>, vector<32x128xbf16>, vector<160x128xf32> -> vector<160x128xf32>
    %19 = vector.broadcast %0 : vector<1x128xf32> to vector<160x128xf32>
    %20 = arith.addf %18, %19 : vector<160x128xf32>
    %cst_17 = arith.constant 2.000000e-01 : f32
    %21 = vector.broadcast %cst_17 : f32 to vector<160x128xf32>
    %22 = arith.mulf %21, %20 : vector<160x128xf32>
    %23 = arith.maximumf %20, %22 : vector<160x128xf32>
    %24 = arith.truncf %23 : vector<160x128xf32> to vector<160x128xbf16>
    %c176 = arith.constant 176 : index
    %c0_18 = arith.constant 0 : index
    %25 = vector.load %arg7[%c176, %c0_18] : memref<336x128xbf16, #tpu.memory_space<vmem>>, vector<160x128xbf16>
    tpu.vector_store %arg7[%c176, %c0_18], %24 {strides = array<i32>} : memref<336x128xbf16, #tpu.memory_space<vmem>>, vector<160x128xbf16>,
    %c160_19 = arith.constant 160 : index
    %c0_20 = arith.constant 0 : index
    %26 = vector.load %arg7[%c160_19, %c0_20] : memref<336x128xbf16, #tpu.memory_space<vmem>>, vector<80x128xbf16>
    %c0_21 = arith.constant 0 : index
    %c0_22 = arith.constant 0 : index
    %27 = vector.load %arg2[%c0_21, %c0_22] : memref<1024x128xbf16, #tpu.memory_space<vmem>>, vector<128x128xbf16>
    %cst_23 = arith.constant dense<0.000000e+00> : vector<80x128xf32>
    %28 = tpu.matmul %26, %27, %cst_23 {dimension_numbers = #tpu.dot_dimension_numbers<[1], [0], [0], [1], [0, 0, 1, 1], [], []>} : vector<80x128xbf16>, vector<128x128xbf16>, vector<80x128xf32> -> vector<80x128xf32>
    %c0_24 = arith.constant 0 : index
    %c0_25 = arith.constant 0 : index
    %29 = vector.load %arg7[%c0_24, %c0_25] : memref<336x128xbf16, #tpu.memory_space<vmem>>, vector<80x128xbf16>
    %c128 = arith.constant 128 : index
    %c0_26 = arith.constant 0 : index
    %30 = vector.load %arg2[%c128, %c0_26] : memref<1024x128xbf16, #tpu.memory_space<vmem>>, vector<128x128xbf16>
    %cst_27 = arith.constant dense<0.000000e+00> : vector<80x128xf32>
    %31 = tpu.matmul %29, %30, %cst_27 {dimension_numbers = #tpu.dot_dimension_numbers<[1], [0], [0], [1], [0, 0, 1, 1], [], []>} : vector<80x128xbf16>, vector<128x128xbf16>, vector<80x128xf32> -> vector<80x128xf32>
    %32 = arith.addf %28, %31 : vector<80x128xf32>
    %c176_28 = arith.constant 176 : index
    %c0_29 = arith.constant 0 : index
    %33 = vector.load %arg7[%c176_28, %c0_29] : memref<336x128xbf16, #tpu.memory_space<vmem>>, vector<80x128xbf16>
    %c256 = arith.constant 256 : index
    %c0_30 = arith.constant 0 : index
    %34 = vector.load %arg2[%c256, %c0_30] : memref<1024x128xbf16, #tpu.memory_space<vmem>>, vector<128x128xbf16>
    %cst_31 = arith.constant dense<0.000000e+00> : vector<80x128xf32>
    %35 = tpu.matmul %33, %34, %cst_31 {dimension_numbers = #tpu.dot_dimension_numbers<[1], [0], [0], [1], [0, 0, 1, 1], [], []>} : vector<80x128xbf16>, vector<128x128xbf16>, vector<80x128xf32> -> vector<80x128xf32>
    %36 = arith.addf %32, %35 : vector<80x128xf32>
    %c16 = arith.constant 16 : index
    %c0_32 = arith.constant 0 : index
    %37 = vector.load %arg7[%c16, %c0_32] : memref<336x128xbf16, #tpu.memory_space<vmem>>, vector<80x128xbf16>
    %c384 = arith.constant 384 : index
    %c0_33 = arith.constant 0 : index
    %38 = vector.load %arg2[%c384, %c0_33] : memref<1024x128xbf16, #tpu.memory_space<vmem>>, vector<128x128xbf16>
    %cst_34 = arith.constant dense<0.000000e+00> : vector<80x128xf32>
    %39 = tpu.matmul %37, %38, %cst_34 {dimension_numbers = #tpu.dot_dimension_numbers<[1], [0], [0], [1], [0, 0, 1, 1], [], []>} : vector<80x128xbf16>, vector<128x128xbf16>, vector<80x128xf32> -> vector<80x128xf32>
    %40 = arith.addf %36, %39 : vector<80x128xf32>
    %41 = vector.broadcast %1 : vector<1x128xf32> to vector<80x128xf32>
    %42 = arith.addf %40, %41 : vector<80x128xf32>
    %cst_35 = arith.constant 2.000000e-01 : f32
    %43 = vector.broadcast %cst_35 : f32 to vector<80x128xf32>
    %44 = arith.mulf %43, %42 : vector<80x128xf32>
    %45 = arith.maximumf %42, %44 : vector<80x128xf32>
    %46 = arith.truncf %45 : vector<80x128xf32> to vector<80x128xbf16>
    %47 = vector.extract_strided_slice %46 {offsets = [0, 0], sizes = [16, 128], strides = [1, 1]} : vector<80x128xbf16> to vector<16x128xbf16>
    %c0_36 = arith.constant 0 : index
    %c0_37 = arith.constant 0 : index
    %48 = vector.load %arg8[%c0_36, %c0_37] : memref<176x128xbf16, #tpu.memory_space<vmem>>, vector<16x128xbf16>
    tpu.vector_store %arg8[%c0_36, %c0_37], %47 {strides = array<i32>} : memref<176x128xbf16, #tpu.memory_space<vmem>>, vector<16x128xbf16>,
    %49 = vector.extract_strided_slice %46 {offsets = [16, 0], sizes = [16, 128], strides = [1, 1]} : vector<80x128xbf16> to vector<16x128xbf16>
    %c96 = arith.constant 96 : index
    %c0_38 = arith.constant 0 : index
    %50 = vector.load %arg8[%c96, %c0_38] : memref<176x128xbf16, #tpu.memory_space<vmem>>, vector<16x128xbf16>
    tpu.vector_store %arg8[%c96, %c0_38], %49 {strides = array<i32>} : memref<176x128xbf16, #tpu.memory_space<vmem>>, vector<16x128xbf16>,
    %51 = vector.extract_strided_slice %46 {offsets = [32, 0], sizes = [16, 128], strides = [1, 1]} : vector<80x128xbf16> to vector<16x128xbf16>
    %c16_39 = arith.constant 16 : index
    %c0_40 = arith.constant 0 : index
    %52 = vector.load %arg8[%c16_39, %c0_40] : memref<176x128xbf16, #tpu.memory_space<vmem>>, vector<16x128xbf16>
    tpu.vector_store %arg8[%c16_39, %c0_40], %51 {strides = array<i32>} : memref<176x128xbf16, #tpu.memory_space<vmem>>, vector<16x128xbf16>,
    %53 = vector.extract_strided_slice %46 {offsets = [48, 0], sizes = [16, 128], strides = [1, 1]} : vector<80x128xbf16> to vector<16x128xbf16>
    %c112 = arith.constant 112 : index
    %c0_41 = arith.constant 0 : index
    %54 = vector.load %arg8[%c112, %c0_41] : memref<176x128xbf16, #tpu.memory_space<vmem>>, vector<16x128xbf16>
    tpu.vector_store %arg8[%c112, %c0_41], %53 {strides = array<i32>} : memref<176x128xbf16, #tpu.memory_space<vmem>>, vector<16x128xbf16>,
    %55 = vector.extract_strided_slice %46 {offsets = [64, 0], sizes = [16, 128], strides = [1, 1]} : vector<80x128xbf16> to vector<16x128xbf16>
    %c32 = arith.constant 32 : index
    %c0_42 = arith.constant 0 : index
    %56 = vector.load %arg8[%c32, %c0_42] : memref<176x128xbf16, #tpu.memory_space<vmem>>, vector<16x128xbf16>
    tpu.vector_store %arg8[%c32, %c0_42], %55 {strides = array<i32>} : memref<176x128xbf16, #tpu.memory_space<vmem>>, vector<16x128xbf16>,
    %c240 = arith.constant 240 : index
    %c0_43 = arith.constant 0 : index
    %57 = vector.load %arg7[%c240, %c0_43] : memref<336x128xbf16, #tpu.memory_space<vmem>>, vector<80x128xbf16>
    %c0_44 = arith.constant 0 : index
    %c0_45 = arith.constant 0 : index
    %58 = vector.load %arg2[%c0_44, %c0_45] : memref<1024x128xbf16, #tpu.memory_space<vmem>>, vector<128x128xbf16>
    %cst_46 = arith.constant dense<0.000000e+00> : vector<80x128xf32>
    %59 = tpu.matmul %57, %58, %cst_46 {dimension_numbers = #tpu.dot_dimension_numbers<[1], [0], [0], [1], [0, 0, 1, 1], [], []>} : vector<80x128xbf16>, vector<128x128xbf16>, vector<80x128xf32> -> vector<80x128xf32>
    %c80 = arith.constant 80 : index
    %c0_47 = arith.constant 0 : index
    %60 = vector.load %arg7[%c80, %c0_47] : memref<336x128xbf16, #tpu.memory_space<vmem>>, vector<80x128xbf16>
    %c128_48 = arith.constant 128 : index
    %c0_49 = arith.constant 0 : index
    %61 = vector.load %arg2[%c128_48, %c0_49] : memref<1024x128xbf16, #tpu.memory_space<vmem>>, vector<128x128xbf16>
    %cst_50 = arith.constant dense<0.000000e+00> : vector<80x128xf32>
    %62 = tpu.matmul %60, %61, %cst_50 {dimension_numbers = #tpu.dot_dimension_numbers<[1], [0], [0], [1], [0, 0, 1, 1], [], []>} : vector<80x128xbf16>, vector<128x128xbf16>, vector<80x128xf32> -> vector<80x128xf32>
    %63 = arith.addf %59, %62 : vector<80x128xf32>
    %c256_51 = arith.constant 256 : index
    %c0_52 = arith.constant 0 : index
    %64 = vector.load %arg7[%c256_51, %c0_52] : memref<336x128xbf16, #tpu.memory_space<vmem>>, vector<80x128xbf16>
    %c256_53 = arith.constant 256 : index
    %c0_54 = arith.constant 0 : index
    %65 = vector.load %arg2[%c256_53, %c0_54] : memref<1024x128xbf16, #tpu.memory_space<vmem>>, vector<128x128xbf16>
    %cst_55 = arith.constant dense<0.000000e+00> : vector<80x128xf32>
    %66 = tpu.matmul %64, %65, %cst_55 {dimension_numbers = #tpu.dot_dimension_numbers<[1], [0], [0], [1], [0, 0, 1, 1], [], []>} : vector<80x128xbf16>, vector<128x128xbf16>, vector<80x128xf32> -> vector<80x128xf32>
    %67 = arith.addf %63, %66 : vector<80x128xf32>
    %c96_56 = arith.constant 96 : index
    %c0_57 = arith.constant 0 : index
    %68 = vector.load %arg7[%c96_56, %c0_57] : memref<336x128xbf16, #tpu.memory_space<vmem>>, vector<80x128xbf16>
    %c384_58 = arith.constant 384 : index
    %c0_59 = arith.constant 0 : index
    %69 = vector.load %arg2[%c384_58, %c0_59] : memref<1024x128xbf16, #tpu.memory_space<vmem>>, vector<128x128xbf16>
    %cst_60 = arith.constant dense<0.000000e+00> : vector<80x128xf32>
    %70 = tpu.matmul %68, %69, %cst_60 {dimension_numbers = #tpu.dot_dimension_numbers<[1], [0], [0], [1], [0, 0, 1, 1], [], []>} : vector<80x128xbf16>, vector<128x128xbf16>, vector<80x128xf32> -> vector<80x128xf32>
    %71 = arith.addf %67, %70 : vector<80x128xf32>
    %72 = vector.broadcast %1 : vector<1x128xf32> to vector<80x128xf32>
    %73 = arith.addf %71, %72 : vector<80x128xf32>
    %cst_61 = arith.constant 2.000000e-01 : f32
    %74 = vector.broadcast %cst_61 : f32 to vector<80x128xf32>
    %75 = arith.mulf %74, %73 : vector<80x128xf32>
    %76 = arith.maximumf %73, %75 : vector<80x128xf32>
    %77 = arith.truncf %76 : vector<80x128xf32> to vector<80x128xbf16>
    %78 = vector.extract_strided_slice %77 {offsets = [0, 0], sizes = [16, 128], strides = [1, 1]} : vector<80x128xbf16> to vector<16x128xbf16>
    %c128_62 = arith.constant 128 : index
    %c0_63 = arith.constant 0 : index
    %79 = vector.load %arg8[%c128_62, %c0_63] : memref<176x128xbf16, #tpu.memory_space<vmem>>, vector<16x128xbf16>
    tpu.vector_store %arg8[%c128_62, %c0_63], %78 {strides = array<i32>} : memref<176x128xbf16, #tpu.memory_space<vmem>>, vector<16x128xbf16>,
    %80 = vector.extract_strided_slice %77 {offsets = [16, 0], sizes = [16, 128], strides = [1, 1]} : vector<80x128xbf16> to vector<16x128xbf16>
    %c48 = arith.constant 48 : index
    %c0_64 = arith.constant 0 : index
    %81 = vector.load %arg8[%c48, %c0_64] : memref<176x128xbf16, #tpu.memory_space<vmem>>, vector<16x128xbf16>
    tpu.vector_store %arg8[%c48, %c0_64], %80 {strides = array<i32>} : memref<176x128xbf16, #tpu.memory_space<vmem>>, vector<16x128xbf16>,
    %82 = vector.extract_strided_slice %77 {offsets = [32, 0], sizes = [16, 128], strides = [1, 1]} : vector<80x128xbf16> to vector<16x128xbf16>
    %c144 = arith.constant 144 : index
    %c0_65 = arith.constant 0 : index
    %83 = vector.load %arg8[%c144, %c0_65] : memref<176x128xbf16, #tpu.memory_space<vmem>>, vector<16x128xbf16>
    tpu.vector_store %arg8[%c144, %c0_65], %82 {strides = array<i32>} : memref<176x128xbf16, #tpu.memory_space<vmem>>, vector<16x128xbf16>,
    %84 = vector.extract_strided_slice %77 {offsets = [48, 0], sizes = [16, 128], strides = [1, 1]} : vector<80x128xbf16> to vector<16x128xbf16>
    %c64 = arith.constant 64 : index
    %c0_66 = arith.constant 0 : index
    %85 = vector.load %arg8[%c64, %c0_66] : memref<176x128xbf16, #tpu.memory_space<vmem>>, vector<16x128xbf16>
    tpu.vector_store %arg8[%c64, %c0_66], %84 {strides = array<i32>} : memref<176x128xbf16, #tpu.memory_space<vmem>>, vector<16x128xbf16>,
    %86 = vector.extract_strided_slice %77 {offsets = [64, 0], sizes = [16, 128], strides = [1, 1]} : vector<80x128xbf16> to vector<16x128xbf16>
    %c160_67 = arith.constant 160 : index
    %c0_68 = arith.constant 0 : index
    %87 = vector.load %arg8[%c160_67, %c0_68] : memref<176x128xbf16, #tpu.memory_space<vmem>>, vector<16x128xbf16>
    tpu.vector_store %arg8[%c160_67, %c0_68], %86 {strides = array<i32>} : memref<176x128xbf16, #tpu.memory_space<vmem>>, vector<16x128xbf16>,
    %cst_69 = arith.constant 0.000000e+00 : bf16
    %88 = vector.broadcast %cst_69 : bf16 to vector<16x128xbf16>
    %c80_70 = arith.constant 80 : index
    %c0_71 = arith.constant 0 : index
    %89 = vector.load %arg8[%c80_70, %c0_71] : memref<176x128xbf16, #tpu.memory_space<vmem>>, vector<16x128xbf16>
    tpu.vector_store %arg8[%c80_70, %c0_71], %88 {strides = array<i32>} : memref<176x128xbf16, #tpu.memory_space<vmem>>, vector<16x128xbf16>,
    %c80_72 = arith.constant 80 : index
    %c0_73 = arith.constant 0 : index
    %90 = vector.load %arg8[%c80_72, %c0_73] : memref<176x128xbf16, #tpu.memory_space<vmem>>, vector<80x128xbf16>
    %c512 = arith.constant 512 : index
    %c0_74 = arith.constant 0 : index
    %91 = vector.load %arg2[%c512, %c0_74] : memref<1024x128xbf16, #tpu.memory_space<vmem>>, vector<128x128xbf16>
    %cst_75 = arith.constant dense<0.000000e+00> : vector<80x128xf32>
    %92 = tpu.matmul %90, %91, %cst_75 {dimension_numbers = #tpu.dot_dimension_numbers<[1], [0], [0], [1], [0, 0, 1, 1], [], []>} : vector<80x128xbf16>, vector<128x128xbf16>, vector<80x128xf32> -> vector<80x128xf32>
    %c0_76 = arith.constant 0 : index
    %c0_77 = arith.constant 0 : index
    %93 = vector.load %arg8[%c0_76, %c0_77] : memref<176x128xbf16, #tpu.memory_space<vmem>>, vector<80x128xbf16>
    %c640 = arith.constant 640 : index
    %c0_78 = arith.constant 0 : index
    %94 = vector.load %arg2[%c640, %c0_78] : memref<1024x128xbf16, #tpu.memory_space<vmem>>, vector<128x128xbf16>
    %cst_79 = arith.constant dense<0.000000e+00> : vector<80x128xf32>
    %95 = tpu.matmul %93, %94, %cst_79 {dimension_numbers = #tpu.dot_dimension_numbers<[1], [0], [0], [1], [0, 0, 1, 1], [], []>} : vector<80x128xbf16>, vector<128x128xbf16>, vector<80x128xf32> -> vector<80x128xf32>
    %96 = arith.addf %92, %95 : vector<80x128xf32>
    %c96_80 = arith.constant 96 : index
    %c0_81 = arith.constant 0 : index
    %97 = vector.load %arg8[%c96_80, %c0_81] : memref<176x128xbf16, #tpu.memory_space<vmem>>, vector<80x128xbf16>
    %c768 = arith.constant 768 : index
    %c0_82 = arith.constant 0 : index
    %98 = vector.load %arg2[%c768, %c0_82] : memref<1024x128xbf16, #tpu.memory_space<vmem>>, vector<128x128xbf16>
    %cst_83 = arith.constant dense<0.000000e+00> : vector<80x128xf32>
    %99 = tpu.matmul %97, %98, %cst_83 {dimension_numbers = #tpu.dot_dimension_numbers<[1], [0], [0], [1], [0, 0, 1, 1], [], []>} : vector<80x128xbf16>, vector<128x128xbf16>, vector<80x128xf32> -> vector<80x128xf32>
    %100 = arith.addf %96, %99 : vector<80x128xf32>
    %c16_84 = arith.constant 16 : index
    %c0_85 = arith.constant 0 : index
    %101 = vector.load %arg8[%c16_84, %c0_85] : memref<176x128xbf16, #tpu.memory_space<vmem>>, vector<80x128xbf16>
    %c896 = arith.constant 896 : index
    %c0_86 = arith.constant 0 : index
    %102 = vector.load %arg2[%c896, %c0_86] : memref<1024x128xbf16, #tpu.memory_space<vmem>>, vector<128x128xbf16>
    %cst_87 = arith.constant dense<0.000000e+00> : vector<80x128xf32>
    %103 = tpu.matmul %101, %102, %cst_87 {dimension_numbers = #tpu.dot_dimension_numbers<[1], [0], [0], [1], [0, 0, 1, 1], [], []>} : vector<80x128xbf16>, vector<128x128xbf16>, vector<80x128xf32> -> vector<80x128xf32>
    %104 = arith.addf %100, %103 : vector<80x128xf32>
    %105 = vector.broadcast %2 : vector<1x128xf32> to vector<80x128xf32>
    %106 = arith.addf %104, %105 : vector<80x128xf32>
    %cst_88 = arith.constant 2.000000e-01 : f32
    %107 = vector.broadcast %cst_88 : f32 to vector<80x128xf32>
    %108 = arith.mulf %107, %106 : vector<80x128xf32>
    %109 = arith.maximumf %106, %108 : vector<80x128xf32>
    %110 = arith.truncf %109 : vector<80x128xf32> to vector<80x128xbf16>
    %c0_89 = arith.constant 0 : index
    %c0_90 = arith.constant 0 : index
    %111 = vector.load %arg3[%c0_89, %c0_90] : memref<128x64xbf16, #tpu.memory_space<vmem>>, vector<128x64xbf16>
    %cst_91 = arith.constant dense<0.000000e+00> : vector<80x64xf32>
    %112 = tpu.matmul %110, %111, %cst_91 {dimension_numbers = #tpu.dot_dimension_numbers<[1], [0], [0], [1], [0, 0, 1, 1], [], []>} : vector<80x128xbf16>, vector<128x64xbf16>, vector<80x64xf32> -> vector<80x64xf32>
    %113 = vector.broadcast %3 : vector<1x64xf32> to vector<80x64xf32>
    %114 = arith.addf %112, %113 : vector<80x64xf32>
    %cst_92 = arith.constant 2.000000e-01 : f32
    %115 = vector.broadcast %cst_92 : f32 to vector<80x64xf32>
    %116 = arith.mulf %115, %114 : vector<80x64xf32>
    %117 = arith.maximumf %114, %116 : vector<80x64xf32>
    %118 = vector.extract_strided_slice %117 {offsets = [0, 0], sizes = [16, 64], strides = [1, 1]} : vector<80x64xf32> to vector<16x64xf32>
    %c0_93 = arith.constant 0 : index
    %c0_94 = arith.constant 0 : index
    %119 = vector.load %arg9[%c0_93, %c0_94] : memref<16x320xf32, #tpu.memory_space<vmem>>, vector<16x64xf32>
    tpu.vector_store %arg9[%c0_93, %c0_94], %118 {strides = array<i32>} : memref<16x320xf32, #tpu.memory_space<vmem>>, vector<16x64xf32>,
    %120 = vector.extract_strided_slice %117 {offsets = [16, 0], sizes = [16, 64], strides = [1, 1]} : vector<80x64xf32> to vector<16x64xf32>
    %c0_95 = arith.constant 0 : index
    %c64_96 = arith.constant 64 : index
    %121 = vector.load %arg9[%c0_95, %c64_96] : memref<16x320xf32, #tpu.memory_space<vmem>>, vector<16x64xf32>
    tpu.vector_store %arg9[%c0_95, %c64_96], %120 {strides = array<i32>} : memref<16x320xf32, #tpu.memory_space<vmem>>, vector<16x64xf32>,
    %122 = vector.extract_strided_slice %117 {offsets = [32, 0], sizes = [16, 64], strides = [1, 1]} : vector<80x64xf32> to vector<16x64xf32>
    %c0_97 = arith.constant 0 : index
    %c128_98 = arith.constant 128 : index
    %123 = vector.load %arg9[%c0_97, %c128_98] : memref<16x320xf32, #tpu.memory_space<vmem>>, vector<16x64xf32>
    tpu.vector_store %arg9[%c0_97, %c128_98], %122 {strides = array<i32>} : memref<16x320xf32, #tpu.memory_space<vmem>>, vector<16x64xf32>,
    %124 = vector.extract_strided_slice %117 {offsets = [48, 0], sizes = [16, 64], strides = [1, 1]} : vector<80x64xf32> to vector<16x64xf32>
    %c0_99 = arith.constant 0 : index
    %c192 = arith.constant 192 : index
    %125 = vector.load %arg9[%c0_99, %c192] : memref<16x320xf32, #tpu.memory_space<vmem>>, vector<16x64xf32>
    tpu.vector_store %arg9[%c0_99, %c192], %124 {strides = array<i32>} : memref<16x320xf32, #tpu.memory_space<vmem>>, vector<16x64xf32>,
    %126 = vector.extract_strided_slice %117 {offsets = [64, 0], sizes = [16, 64], strides = [1, 1]} : vector<80x64xf32> to vector<16x64xf32>
    %c0_100 = arith.constant 0 : index
    %c256_101 = arith.constant 256 : index
    %127 = vector.load %arg9[%c0_100, %c256_101] : memref<16x320xf32, #tpu.memory_space<vmem>>, vector<16x64xf32>
    tpu.vector_store %arg9[%c0_100, %c256_101], %126 {strides = array<i32>} : memref<16x320xf32, #tpu.memory_space<vmem>>, vector<16x64xf32>,
    %c0_102 = arith.constant 0 : index
    %c0_103 = arith.constant 0 : index
    %128 = vector.load %arg9[%c0_102, %c0_103] : memref<16x320xf32, #tpu.memory_space<vmem>>, vector<2x320xf32>
    %129 = arith.truncf %128 : vector<2x320xf32> to vector<2x320xbf16>
    %c0_104 = arith.constant 0 : index
    %c0_105 = arith.constant 0 : index
    %130 = vector.load %arg4[%c0_104, %c0_105] : memref<1600x32xbf16, #tpu.memory_space<vmem>>, vector<320x32xbf16>
    %cst_106 = arith.constant dense<0.000000e+00> : vector<2x32xf32>
    %131 = tpu.matmul %129, %130, %cst_106 {dimension_numbers = #tpu.dot_dimension_numbers<[1], [0], [0], [1], [0, 0, 1, 1], [], []>} : vector<2x320xbf16>, vector<320x32xbf16>, vector<2x32xf32> -> vector<2x32xf32>
    %c2_107 = arith.constant 2 : index
    %c0_108 = arith.constant 0 : index
    %132 = vector.load %arg9[%c2_107, %c0_108] : memref<16x320xf32, #tpu.memory_space<vmem>>, vector<2x320xf32>
    %133 = arith.truncf %132 : vector<2x320xf32> to vector<2x320xbf16>
    %c320 = arith.constant 320 : index
    %c0_109 = arith.constant 0 : index
    %134 = vector.load %arg4[%c320, %c0_109] : memref<1600x32xbf16, #tpu.memory_space<vmem>>, vector<320x32xbf16>
    %cst_110 = arith.constant dense<0.000000e+00> : vector<2x32xf32>
    %135 = tpu.matmul %133, %134, %cst_110 {dimension_numbers = #tpu.dot_dimension_numbers<[1], [0], [0], [1], [0, 0, 1, 1], [], []>} : vector<2x320xbf16>, vector<320x32xbf16>, vector<2x32xf32> -> vector<2x32xf32>
    %136 = arith.addf %131, %135 : vector<2x32xf32>
    %c4_111 = arith.constant 4 : index
    %c0_112 = arith.constant 0 : index
    %137 = vector.load %arg9[%c4_111, %c0_112] : memref<16x320xf32, #tpu.memory_space<vmem>>, vector<2x320xf32>
    %138 = arith.truncf %137 : vector<2x320xf32> to vector<2x320xbf16>
    %c640_113 = arith.constant 640 : index
    %c0_114 = arith.constant 0 : index
    %139 = vector.load %arg4[%c640_113, %c0_114] : memref<1600x32xbf16, #tpu.memory_space<vmem>>, vector<320x32xbf16>
    %cst_115 = arith.constant dense<0.000000e+00> : vector<2x32xf32>
    %140 = tpu.matmul %138, %139, %cst_115 {dimension_numbers = #tpu.dot_dimension_numbers<[1], [0], [0], [1], [0, 0, 1, 1], [], []>} : vector<2x320xbf16>, vector<320x32xbf16>, vector<2x32xf32> -> vector<2x32xf32>
    %141 = arith.addf %136, %140 : vector<2x32xf32>
    %c6 = arith.constant 6 : index
    %c0_116 = arith.constant 0 : index
    %142 = vector.load %arg9[%c6, %c0_116] : memref<16x320xf32, #tpu.memory_space<vmem>>, vector<2x320xf32>
    %143 = arith.truncf %142 : vector<2x320xf32> to vector<2x320xbf16>
    %c960 = arith.constant 960 : index
    %c0_117 = arith.constant 0 : index
    %144 = vector.load %arg4[%c960, %c0_117] : memref<1600x32xbf16, #tpu.memory_space<vmem>>, vector<320x32xbf16>
    %cst_118 = arith.constant dense<0.000000e+00> : vector<2x32xf32>
    %145 = tpu.matmul %143, %144, %cst_118 {dimension_numbers = #tpu.dot_dimension_numbers<[1], [0], [0], [1], [0, 0, 1, 1], [], []>} : vector<2x320xbf16>, vector<320x32xbf16>, vector<2x32xf32> -> vector<2x32xf32>
    %146 = arith.addf %141, %145 : vector<2x32xf32>
    %c8 = arith.constant 8 : index
    %c0_119 = arith.constant 0 : index
    %147 = vector.load %arg9[%c8, %c0_119] : memref<16x320xf32, #tpu.memory_space<vmem>>, vector<2x320xf32>
    %148 = arith.truncf %147 : vector<2x320xf32> to vector<2x320xbf16>
    %c1280 = arith.constant 1280 : index
    %c0_120 = arith.constant 0 : index
    %149 = vector.load %arg4[%c1280, %c0_120] : memref<1600x32xbf16, #tpu.memory_space<vmem>>, vector<320x32xbf16>
    %cst_121 = arith.constant dense<0.000000e+00> : vector<2x32xf32>
    %150 = tpu.matmul %148, %149, %cst_121 {dimension_numbers = #tpu.dot_dimension_numbers<[1], [0], [0], [1], [0, 0, 1, 1], [], []>} : vector<2x320xbf16>, vector<320x32xbf16>, vector<2x32xf32> -> vector<2x32xf32>
    %151 = arith.addf %146, %150 : vector<2x32xf32>
    %152 = vector.broadcast %4 : vector<1x32xf32> to vector<2x32xf32>
    %153 = arith.addf %151, %152 : vector<2x32xf32>
    %cst_122 = arith.constant 0.000000e+00 : f32
    %154 = vector.broadcast %cst_122 : f32 to vector<8x128xf32>
    %c0_123 = arith.constant 0 : index
    %c0_124 = arith.constant 0 : index
    %155 = vector.load %arg6[%c0_123, %c0_124] : memref<8x128xf32, #tpu.memory_space<vmem>>, vector<8x128xf32>
    tpu.vector_store %arg6[%c0_123, %c0_124], %154 {strides = array<i32>} : memref<8x128xf32, #tpu.memory_space<vmem>>, vector<8x128xf32>,
    %c0_125 = arith.constant 0 : index
    %c0_126 = arith.constant 0 : index
    %156 = vector.load %arg6[%c0_125, %c0_126] : memref<8x128xf32, #tpu.memory_space<vmem>>, vector<2x32xf32>
    tpu.vector_store %arg6[%c0_125, %c0_126], %153 {strides = array<i32>} : memref<8x128xf32, #tpu.memory_space<vmem>>, vector<2x32xf32>,
    return
  }
}

</mosaic_0001>

<bundles_post_ra>
// kernel: encoder_forward.1
= control target key start
LH: loop header
LB: loop body
LE: loop exit
PB: predicated region body
PF: predicated region fallthrough
CT: control target
= control target key end

     0   :  { %vm116_vm0 = vcmask 261120   ;;  %v5246_v23 = vmov 0   ;;  %vm2501_vm1 = vcmask 523264   ;;  %s5247_s23 = smov 64   ;;  %vm2512_vm2 = vcmask 1048064   ;;  %s6146_s1 = inlined_call_operand.vmem [shape: bf16[32,128], index: 1, kind: input, shape index: {}]   ;;  %s6147_s5 = inlined_call_operand.vmem [shape: f32[8,128], index: 5, kind: input, shape index: {}]   ;;  %s6148_s0 = inlined_call_operand.vmem [shape: bf16[320,32], index: 0, kind: input, shape index: {}]   ;;  %s6149_s2 = inlined_call_operand.vmem [shape: bf16[1024,128], index: 2, kind: input, shape index: {}]   ;;  %s6150_s3 = inlined_call_operand.vmem [shape: bf16[128,64], index: 3, kind: input, shape index: {}]   ;;  %s6151_s4 = inlined_call_operand.vmem [shape: bf16[1600,32], index: 4, kind: input, shape index: {}]   ;;  %s6152_s6 = inlined_call_operand.vmem [shape: f32[8,128], index: 6, kind: output, shape index: {}]  }
   0x1   :  { %v4775_v0 = vld [vmem:[%s6146_s1 + $0x8] sm:$0xff]  ;;  %v4774_v1 = vld [vmem:[%s6146_s1] sm:$0xff]  ;;  %v4786_v3 = vld [vmem:[%s6148_s0 + $0x50] sm:$0xff]  ;;  %286 = vst [vmem:[#allocation2 + $0x50] sm:$0xf] %v5246_v23  ;;  %vm3599_vm3 = vcmask 254976  }
   0x2   :  { %153 = vmatpush.bf16.msra.mxu0 %v4775_v0  ;;  %394 = vmatpush.bf16.msra.mxu1 %v4775_v0  ;;  %v4776_v2 = vld [vmem:[%s6148_s0] sm:$0xff]  ;;  %v4777_v4 = vld [vmem:[%s6148_s0 + $0x8] sm:$0xff]  ;;  %v4787_v5 = vld [vmem:[%s6148_s0 + $0x58] sm:$0xff]  ;;  %287 = vst [vmem:[#allocation2 + $0x54] sm:$0xf] %v5246_v23 }
   0x3   :  { %v4778_v6 = vld [vmem:[%s6148_s0 + $0x10] sm:$0xff]  ;;  %v4788_v7 = vld [vmem:[%s6148_s0 + $0x60] sm:$0xff]  ;;  %v4808_v8 = vld [vmem:[%s6149_s2 + $0x38] sm:$0xff]  ;;  %1772 = vst [vmem:[#allocation3 + $0x28] sm:$0xf] %v5246_v23 }
   0x4   :  { %v4821_v9 = vld [vmem:[%s6149_s2 + $0x78] sm:$0xff]  ;;  %769 = vmatpush.bf16.msra.mxu3 %v4808_v8  ;;  %v4807_v10 = vld [vmem:[%s6149_s2 + $0x30] sm:$0xff]  ;;  %v4806_v11 = vld [vmem:[%s6149_s2 + $0x28] sm:$0xff]  ;;  %1773 = vst [vmem:[#allocation3 + $0x2c] sm:$0xf] %v5246_v23 }
   0x5   :  { %657 = vmatpush.bf16.msra.mxu2 %v4821_v9  ;;  %v4805_v12 = vld [vmem:[%s6149_s2 + $0x20] sm:$0xff]  ;;  %v4779_v13 = vld [vmem:[%s6148_s0 + $0x18] sm:$0xff]  ;;  %v4789_v14 = vld [vmem:[%s6148_s0 + $0x68] sm:$0xff] }
   0x6   :  { %154 = vmatpush.bf16.msra.mxu0 %v4774_v1  ;;  %395 = vmatpush.bf16.msra.mxu1 %v4774_v1  ;;  %v4804_v15 = vld [vmem:[%s6149_s2 + $0x18] sm:$0xff]  ;;  %v4780_v16 = vld [vmem:[%s6148_s0 + $0x20] sm:$0xff]  ;;  %v4820_v17 = vld [vmem:[%s6149_s2 + $0x70] sm:$0xff] }
   0x7   :  { %v4803_v18 = vld [vmem:[%s6149_s2 + $0x10] sm:$0xff]  ;;  %v4781_v19 = vld [vmem:[%s6148_s0 + $0x28] sm:$0xff]  ;;  %v4818_v24 = vld [vmem:[%s6149_s2 + $0x60] sm:$0xff] }
   0x8   :  { %770 = vmatpush.bf16.msra.mxu3 %v4807_v10  ;;  %v4790_v20 = vld [vmem:[%s6148_s0 + $0x70] sm:$0xff]  ;;  %v4819_v21 = vld [vmem:[%s6149_s2 + $0x68] sm:$0xff]  ;;  %v4801_v25 = vld [vmem:[%s6149_s2] sm:$0xff] }
   0x9   :  { %3653 = vmatmul.msk.bf16.vlgmr.msra.gmra.mxu0 %vm116_vm0, %v4776_v2  ;;  %3703 = vmatmul.msk.bf16.vlgmr.msra.gmra.mxu1 %vm116_vm0, %v4786_v3  ;;  %v4802_v22 = vld [vmem:[%s6149_s2 + $0x8] sm:$0xff]  ;;  %v4796_v26 = vld [vmem:[#allocation2 + $0x50] sm:$0xff]  ;;  %v4817_v27 = vld [vmem:[%s6149_s2 + $0x58] sm:$0xff] }
   0xa   :  { %658 = vmatpush.bf16.msra.mxu2 %v4820_v17  ;;  %v4816_v28 = vld [vmem:[%s6149_s2 + $0x50] sm:$0xff]  ;;  %v4791_v30 = vld [vmem:[%s6148_s0 + $0x78] sm:$0xff]  ;;  %v4815_v31 = vld [vmem:[%s6149_s2 + $0x48] sm:$0xff] }
   0xb   :  { %v4782_v29 = vld [vmem:[%s6148_s0 + $0x30] sm:$0xff]  ;;  %v4814_v32 = vld [vmem:[%s6149_s2 + $0x40] sm:$0xff]  ;;  %v4783_v35 = vld [vmem:[%s6148_s0 + $0x38] sm:$0xff] }
   0xc   :  { %771 = vmatpush.bf16.msra.mxu3 %v4806_v11  ;;  %v4792_v36 = vld [vmem:[%s6148_s0 + $0x80] sm:$0xff]  ;;  %v4834_v40 = vld [vmem:[%s6149_s2 + $0xb8] sm:$0xff]  ;;  %v4793_v58 = vld [vmem:[%s6148_s0 + $0x88] sm:$0xff] }
   0xd   :  { %v5399_v37 = vld [vmem:[%s6147_s5] ss:$0 sm:$0xff]  ;;  %v4847_v59 = vld [vmem:[%s6149_s2 + $0xf8] sm:$0xff]  ;;  %v4833_v0 = vld [vmem:[%s6149_s2 + $0xb0] sm:$0xff] }
   0xe   :  { %659 = vmatpush.bf16.msra.mxu2 %v4819_v21  ;;  %v4784_v57 = vld [vmem:[%s6148_s0 + $0x40] sm:$0xff]  ;;  %v4873_v60 = vld [vmem:[%s6149_s2 + $0x78] sm:$0xff]  ;;  %v4846_v1 = vld [vmem:[%s6149_s2 + $0xf0] sm:$0xff] }
   0xf   :  { %v4860_v61 = vld [vmem:[%s6149_s2 + $0x38] sm:$0xff]  ;;  %1280 = vmatpush.bf16.msrb.mxu0 %v4873_v60  ;;  %v4794_v21 = vld [vmem:[%s6148_s0 + $0x90] sm:$0xff]  ;;  %v4845_v23 = vld [vmem:[%s6149_s2 + $0xe8] sm:$0xff] }
  0x10   :  { %772 = vmatpush.bf16.msra.mxu3 %v4805_v12  ;;  %1392 = vmatpush.bf16.msrb.mxu1 %v4860_v61 }
  0x12   :  { %660 = vmatpush.bf16.msra.mxu2 %v4818_v24  ;;  %v4872_v24 = vld [vmem:[%s6149_s2 + $0x70] sm:$0xff] }
  0x13   :  { %1281 = vmatpush.bf16.msrb.mxu0 %v4872_v24  ;;  %v4886_v24 = vld [vmem:[%s6149_s2 + $0xb8] sm:$0xff] }
  0x14   :  { %773 = vmatpush.bf16.msra.mxu3 %v4804_v15 }
  0x16   :  { %661 = vmatpush.bf16.msra.mxu2 %v4817_v27 }
  0x18   :  { %774 = vmatpush.bf16.msra.mxu3 %v4803_v18 }
  0x19   :  { %3654 = vmatmul.msk.bf16.gmra.mxu0 %vm116_vm0, %v4777_v4  ;;  %3704 = vmatmul.msk.bf16.gmra.mxu1 %vm116_vm0, %v4787_v5 }
  0x1a   :  { %662 = vmatpush.bf16.msra.mxu2 %v4816_v28  ;;  %v4831_v28 = vld [vmem:[%s6149_s2 + $0xa0] sm:$0xff] }
  0x1c   :  { %775 = vmatpush.bf16.msra.mxu3 %v4802_v22  ;;  %v4832_v22 = vld [vmem:[%s6149_s2 + $0xa8] sm:$0xff] }
  0x1e   :  { %663 = vmatpush.bf16.msra.mxu2 %v4815_v31 }
  0x20   :  { %776 = vmatpush.bf16.msra.mxu3 %v4801_v25 }
  0x22   :  { %664 = vmatpush.bf16.msra.mxu2 %v4814_v32 }
  0x23   :  { %777 = vmatmul.bf16.vlgmr.msra.gmra.mxu3 %v4796_v26  ;;  %v4859_v26 = vld [vmem:[%s6149_s2 + $0x30] sm:$0xff] }
  0x24   :  { %1055 = vmatpush.bf16.msrb.mxu3 %v4847_v59  ;;  %1393 = vmatpush.bf16.msrb.mxu1 %v4859_v26 }
  0x26   :  { %907 = vmatpush.bf16.msrb.mxu2 %v4834_v40 }
  0x28   :  { %1056 = vmatpush.bf16.msrb.mxu3 %v4846_v1 }
  0x29   :  { %3655 = vmatmul.msk.bf16.gmra.mxu0 %vm116_vm0, %v4778_v6  ;;  %3705 = vmatmul.msk.bf16.gmra.mxu1 %vm116_vm0, %v4788_v7 }
  0x2a   :  { %908 = vmatpush.bf16.msrb.mxu2 %v4833_v0 }
  0x2c   :  { %1057 = vmatpush.bf16.msrb.mxu3 %v4845_v23 }
  0x2e   :  { %909 = vmatpush.bf16.msrb.mxu2 %v4832_v22 }
  0x32   :  { %910 = vmatpush.bf16.msrb.mxu2 %v4831_v28 }
  0x39   :  { %3656 = vmatmul.msk.bf16.gmra.mxu0 %vm116_vm0, %v4779_v13  ;;  %3706 = vmatmul.msk.bf16.gmra.mxu1 %vm116_vm0, %v4789_v14 }
  0x49   :  { %3657 = vmatmul.msk.bf16.gmra.mxu0 %vm116_vm0, %v4780_v16  ;;  %3707 = vmatmul.msk.bf16.gmra.mxu1 %vm116_vm0, %v4790_v20  ;;  %v4785_v20 = vld [vmem:[%s6148_s0 + $0x48] sm:$0xff] }
  0x59   :  { %3658 = vmatmul.msk.bf16.gmra.mxu0 %vm116_vm0, %v4781_v19  ;;  %3708 = vmatmul.msk.bf16.gmra.mxu1 %vm116_vm0, %v4791_v30 }
  0x69   :  { %3659 = vmatmul.msk.bf16.gmra.mxu0 %vm116_vm0, %v4782_v29  ;;  %3709 = vmatmul.msk.bf16.gmra.mxu1 %vm116_vm0, %v4792_v36  ;;  %v4844_v29 = vld [vmem:[%s6149_s2 + $0xe0] sm:$0xff] }
  0x6a   :  { %1058 = vmatpush.bf16.msrb.mxu3 %v4844_v29 }
  0x79   :  { %3660 = vmatmul.msk.bf16.gmra.mxu0 %vm116_vm0, %v4783_v35  ;;  %3710 = vmatmul.msk.bf16.gmra.mxu1 %vm116_vm0, %v4793_v58 }
  0x86   :  { %v156_v33 = vpop.f32.mrf.mxu0  ;;  %v397_v34 = vpop.f32.mrf.mxu1 }
  0x87   :  { %v398_v38 = vadd.f32 %v5399_v37, %v397_v34  ;;  %v157_v39 = vadd.f32 %v5399_v37, %v156_v33 }
  0x89   :  { %v447_v41 = vmul.f32 0.2, %v398_v38  ;;  %v206_v44 = vmul.f32 0.2, %v157_v39  ;;  %3661 = vmatmul.msk.bf16.gmra.mxu0 %vm116_vm0, %v4784_v57  ;;  %3711 = vmatmul.msk.bf16.gmra.mxu1 %vm116_vm0, %v4794_v21  ;;  %v4840_v57 = vld [vmem:[%s6149_s2 + $0xc0] sm:$0xff] }
  0x8b   :  { %v467_v47 = vmax.f32 %v398_v38, %v447_v41  ;;  %v226_v50 = vmax.f32 %v157_v39, %v206_v44  ;;  %v4843_v39 = vld [vmem:[%s6149_s2 + $0xd8] sm:$0xff] }
  0x8c   :  { %1059 = vmatpush.bf16.msrb.mxu3 %v4843_v39 }
  0x8e   :  { %v158_v42 = vpop.f32.mrf.mxu0  ;;  %v399_v43 = vpop.f32.mrf.mxu1 }
  0x8f   :  { %v159_v45 = vadd.f32 %v5399_v37, %v158_v42  ;;  %v400_v46 = vadd.f32 %v5399_v37, %v399_v43 }
  0x91   :  { %v207_v48 = vmul.f32 0.2, %v159_v45  ;;  %v448_v49 = vmul.f32 0.2, %v400_v46 }
  0x93   :  { %v227_v51 = vmax.f32 %v159_v45, %v207_v48  ;;  %v468_v52 = vmax.f32 %v400_v46, %v448_v49  ;;  %v4842_v46 = vld [vmem:[%s6149_s2 + $0xd0] sm:$0xff] }
  0x94   :  { %1060 = vmatpush.bf16.msrb.mxu3 %v4842_v46 }
  0x95   :  { %v5063_v53 = vpack.c.bf16 %v227_v51, %v226_v50  ;;  %v5113_v54 = vpack.c.bf16 %v468_v52, %v467_v47  ;;  %v4830_v51 = vld [vmem:[%s6149_s2 + $0x98] sm:$0xff]  ;;  %v4871_v52 = vld [vmem:[%s6149_s2 + $0x68] sm:$0xff] }
  0x96   :  { %v161_v55 = vpop.f32.mrf.mxu0  ;;  %v402_v56 = vpop.f32.mrf.mxu1  ;;  %911 = vmatpush.bf16.msrb.mxu2 %v4830_v51  ;;  %1282 = vmatpush.bf16.msrb.mxu0 %v4871_v52 }
  0x97   :  { %5064 = vst [vmem:[#allocation2] sm:$0xff] %v5063_v53   ;;  %v403_v62 = vadd.f32 %v5399_v37, %v402_v56  ;;  %v162_v63 = vadd.f32 %v5399_v37, %v161_v55  ;;  %v4858_v53 = vld [vmem:[%s6149_s2 + $0x28] sm:$0xff]  ;;  %v4829_v56 = vld [vmem:[%s6149_s2 + $0x90] sm:$0xff] }
  0x98   :  { %5219 = vst [vmem:[#allocation2 + $0x58] sm:$0xff] %v5113_v54   ;;  %v4841_v54 = vld [vmem:[%s6149_s2 + $0xc8] sm:$0xff]  ;;  %1394 = vmatpush.bf16.msrb.mxu1 %v4858_v53 }
  0x99   :  { %v449_v2 = vmul.f32 0.2, %v403_v62  ;;  %v208_v6 = vmul.f32 0.2, %v162_v63  ;;  %3662 = vmatmul.msk.bf16.gmra.mxu0 %vm116_vm0, %v4785_v20  ;;  %1061 = vmatpush.bf16.msrb.mxu3 %v4841_v54  ;;  %v4884_v54 = vld [vmem:[%s6149_s2 + $0xa8] sm:$0xff] }
  0x9a   :  { %912 = vmatpush.bf16.msrb.mxu2 %v4829_v56  ;;  %v4868_v56 = vld [vmem:[%s6149_s2 + $0x50] sm:$0xff] }
  0x9b   :  { %v469_v10 = vmax.f32 %v403_v62, %v449_v2  ;;  %v228_v13 = vmax.f32 %v162_v63, %v208_v6  ;;  %v4795_v6 = vld [vmem:[%s6148_s0 + $0x98] sm:$0xff] }
  0x9c   :  { %3712 = vmatmul.msk.bf16.gmra.mxu1 %vm116_vm0, %v4795_v6 }
  0x9d   :  { %1062 = vmatpush.bf16.msrb.mxu3 %v4840_v57  ;;  %v4855_v57 = vld [vmem:[%s6149_s2 + $0x10] sm:$0xff] }
  0x9e   :  { %v163_v3 = vpop.f32.mrf.mxu0  ;;  %v404_v4 = vpop.f32.mrf.mxu1  ;;  %v4809_v5 = vld [vmem:[#allocation2] sm:$0xff] }
  0x9f   :  { %v164_v7 = vadd.f32 %v5399_v37, %v163_v3  ;;  %v405_v8 = vadd.f32 %v5399_v37, %v404_v4  ;;  %v4797_v9 = vld [vmem:[#allocation2 + $0x58] sm:$0xff]  ;;  %665 = vmatmul.bf16.vlgmr.msra.gmra.mxu2 %v4809_v5 }
  0xa0   :  { %782 = vmatmul.bf16.gmra.mxu3 %v4797_v9  ;;  %v4857_v9 = vld [vmem:[%s6149_s2 + $0x20] sm:$0xff]  ;;  %v4822_v46 = vld [vmem:[#allocation2 + $0x58] sm:$0xff] }
  0xa1   :  { %v209_v11 = vmul.f32 0.2, %v164_v7  ;;  %v450_v12 = vmul.f32 0.2, %v405_v8  ;;  %1395 = vmatpush.bf16.msrb.mxu1 %v4857_v9 }
  0xa3   :  { %v229_v14 = vmax.f32 %v164_v7, %v209_v11  ;;  %v470_v15 = vmax.f32 %v405_v8, %v450_v12  ;;  %v4828_v7 = vld [vmem:[%s6149_s2 + $0x88] sm:$0xff]  ;;  %v4870_v8 = vld [vmem:[%s6149_s2 + $0x60] sm:$0xff] }
  0xa4   :  { %913 = vmatpush.bf16.msrb.mxu2 %v4828_v7  ;;  %1283 = vmatpush.bf16.msrb.mxu0 %v4870_v8 }
  0xa5   :  { %v5068_v16 = vpack.c.bf16 %v229_v14, %v228_v13  ;;  %v5118_v17 = vpack.c.bf16 %v470_v15, %v469_v10  ;;  %v4827_v13 = vld [vmem:[%s6149_s2 + $0x80] sm:$0xff] }
  0xa6   :  { %v166_v18 = vpop.f32.mrf.mxu0  ;;  %v407_v19 = vpop.f32.mrf.mxu1 }
  0xa7   :  { %5210 = vst [vmem:[#allocation2 + $0x8] sm:$0xff] %v5068_v16   ;;  %v408_v25 = vadd.f32 %v5399_v37, %v407_v19  ;;  %v167_v27 = vadd.f32 %v5399_v37, %v166_v18 }
  0xa8   :  { %5220 = vst [vmem:[#allocation2 + $0x60] sm:$0xff] %v5118_v17   ;;  %914 = vmatpush.bf16.msrb.mxu2 %v4827_v13 }
  0xa9   :  { %v451_v30 = vmul.f32 0.2, %v408_v25  ;;  %v210_v34 = vmul.f32 0.2, %v167_v27 }
  0xab   :  { %v471_v40 = vmax.f32 %v408_v25, %v451_v30  ;;  %v230_v43 = vmax.f32 %v167_v27, %v210_v34  ;;  %v4899_v25 = vld [vmem:[%s6149_s2 + $0xf8] sm:$0xff]  ;;  %v4898_v34 = vld [vmem:[%s6149_s2 + $0xf0] sm:$0xff] }
  0xac   :  { %1530 = vmatpush.bf16.msra.mxu2 %v4886_v24  ;;  %1678 = vmatpush.bf16.msra.mxu3 %v4899_v25  ;;  %v4882_v25 = vld [vmem:[%s6149_s2 + $0x98] sm:$0xff] }
  0xae   :  { %v168_v31 = vpop.f32.mrf.mxu0  ;;  %v409_v32 = vpop.f32.mrf.mxu1  ;;  %v4810_v33 = vld [vmem:[#allocation2 + $0x8] sm:$0xff] }
  0xaf   :  { %v169_v35 = vadd.f32 %v5399_v37, %v168_v31  ;;  %v410_v36 = vadd.f32 %v5399_v37, %v409_v32  ;;  %v4798_v38 = vld [vmem:[#allocation2 + $0x60] sm:$0xff]  ;;  %670 = vmatmul.bf16.gmra.mxu2 %v4810_v33  ;;  %v4835_v30 = vld [vmem:[#allocation2 + $0x8] sm:$0xff]  ;;  %v4869_v31 = vld [vmem:[%s6149_s2 + $0x58] sm:$0xff] }
  0xb0   :  { %787 = vmatmul.bf16.gmra.mxu3 %v4798_v38  ;;  %v4856_v32 = vld [vmem:[%s6149_s2 + $0x18] sm:$0xff]  ;;  %v4885_v33 = vld [vmem:[%s6149_s2 + $0xb0] sm:$0xff]  ;;  %1284 = vmatpush.bf16.msrb.mxu0 %v4869_v31 }
  0xb1   :  { %v211_v41 = vmul.f32 0.2, %v169_v35  ;;  %v452_v42 = vmul.f32 0.2, %v410_v36  ;;  %1396 = vmatpush.bf16.msrb.mxu1 %v4856_v32  ;;  %1531 = vmatpush.bf16.msra.mxu2 %v4885_v33 }
  0xb2   :  { %1679 = vmatpush.bf16.msra.mxu3 %v4898_v34  ;;  %v4892_v34 = vld [vmem:[%s6149_s2 + $0xc0] sm:$0xff] }
  0xb3   :  { %v231_v44 = vmax.f32 %v169_v35, %v211_v41  ;;  %v472_v45 = vmax.f32 %v410_v36, %v452_v42 }
  0xb4   :  { %1285 = vmatpush.bf16.msrb.mxu0 %v4868_v56 }
  0xb5   :  { %v5073_v47 = vpack.c.bf16 %v231_v44, %v230_v43  ;;  %v5123_v48 = vpack.c.bf16 %v472_v45, %v471_v40  ;;  %1532 = vmatpush.bf16.msra.mxu2 %v4884_v54  ;;  %1397 = vmatpush.bf16.msrb.mxu1 %v4855_v57  ;;  %v4880_v54 = vld [vmem:[%s6149_s2 + $0x88] sm:$0xff] }
  0xb6   :  { %v171_v49 = vpop.f32.mrf.mxu0  ;;  %v412_v50 = vpop.f32.mrf.mxu1 }
  0xb7   :  { %5211 = vst [vmem:[#allocation2 + $0x10] sm:$0xff] %v5073_v47   ;;  %v413_v55 = vadd.f32 %v5399_v37, %v412_v50  ;;  %v172_v58 = vadd.f32 %v5399_v37, %v171_v49 }
  0xb8   :  { %5221 = vst [vmem:[#allocation2 + $0x68] sm:$0xff] %v5123_v48  }
  0xb9   :  { %v453_v59 = vmul.f32 0.2, %v413_v55  ;;  %v212_v63 = vmul.f32 0.2, %v172_v58 }
  0xbb   :  { %v473_v3 = vmax.f32 %v413_v55, %v453_v59  ;;  %v232_v10 = vmax.f32 %v172_v58, %v212_v63  ;;  %v4897_v55 = vld [vmem:[%s6149_s2 + $0xe8] sm:$0xff]  ;;  %v4896_v63 = vld [vmem:[%s6149_s2 + $0xe0] sm:$0xff] }
  0xbc   :  { %1680 = vmatpush.bf16.msra.mxu3 %v4897_v55 }
  0xbe   :  { %v173_v60 = vpop.f32.mrf.mxu0  ;;  %v414_v61 = vpop.f32.mrf.mxu1  ;;  %v4811_v62 = vld [vmem:[#allocation2 + $0x10] sm:$0xff] }
  0xbf   :  { %v174_v0 = vadd.f32 %v5399_v37, %v173_v60  ;;  %v415_v1 = vadd.f32 %v5399_v37, %v414_v61  ;;  %v4799_v2 = vld [vmem:[#allocation2 + $0x68] sm:$0xff]  ;;  %675 = vmatmul.bf16.gmra.mxu2 %v4811_v62  ;;  %v4836_v47 = vld [vmem:[#allocation2 + $0x10] sm:$0xff]  ;;  %v4883_v60 = vld [vmem:[%s6149_s2 + $0xa0] sm:$0xff] }
  0xc0   :  { %792 = vmatmul.bf16.gmra.mxu3 %v4799_v2  ;;  %v4867_v61 = vld [vmem:[%s6149_s2 + $0x48] sm:$0xff]  ;;  %1533 = vmatpush.bf16.msra.mxu2 %v4883_v60 }
  0xc1   :  { %v213_v4 = vmul.f32 0.2, %v174_v0  ;;  %v454_v5 = vmul.f32 0.2, %v415_v1  ;;  %v4854_v62 = vld [vmem:[%s6149_s2 + $0x8] sm:$0xff]  ;;  %1681 = vmatpush.bf16.msra.mxu3 %v4896_v63  ;;  %1286 = vmatpush.bf16.msrb.mxu0 %v4867_v61 }
  0xc2   :  { %1398 = vmatpush.bf16.msrb.mxu1 %v4854_v62  ;;  %v4879_v62 = vld [vmem:[%s6149_s2 + $0x80] sm:$0xff] }
  0xc3   :  { %v233_v11 = vmax.f32 %v174_v0, %v213_v4  ;;  %v474_v12 = vmax.f32 %v415_v1, %v454_v5  ;;  %v4866_v4 = vld [vmem:[%s6149_s2 + $0x40] sm:$0xff] }
  0xc4   :  { %v4853_v5 = vld [vmem:[%s6149_s2] sm:$0xff]  ;;  %1534 = vmatpush.bf16.msra.mxu2 %v4882_v25 }
  0xc5   :  { %v5078_v14 = vpack.c.bf16 %v233_v11, %v232_v10  ;;  %v5128_v15 = vpack.c.bf16 %v474_v12, %v473_v3  ;;  %1287 = vmatpush.bf16.msrb.mxu0 %v4866_v4  ;;  %v4823_v12 = vld [vmem:[#allocation2 + $0x60] sm:$0xff] }
  0xc6   :  { %v176_v16 = vpop.f32.mrf.mxu0  ;;  %v417_v36 = vpop.f32.mrf.mxu1  ;;  %1399 = vmatpush.bf16.msrb.mxu1 %v4853_v5 }
  0xc7   :  { %5212 = vst [vmem:[#allocation2 + $0x18] sm:$0xff] %v5078_v14   ;;  %v177_v17 = vadd.f32 %v5399_v37, %v176_v16  ;;  %v418_v39 = vadd.f32 %v5399_v37, %v417_v36 }
  0xc8   :  { %5222 = vst [vmem:[#allocation2 + $0x70] sm:$0xff] %v5128_v15  }
  0xc9   :  { %v214_v20 = vmul.f32 0.2, %v177_v17  ;;  %v455_v41 = vmul.f32 0.2, %v418_v39 }
  0xcb   :  { %v234_v26 = vmax.f32 %v177_v17, %v214_v20  ;;  %v475_v49 = vmax.f32 %v418_v39, %v455_v41  ;;  %v4895_v20 = vld [vmem:[%s6149_s2 + $0xd8] sm:$0xff] }
  0xcc   :  { %1682 = vmatpush.bf16.msra.mxu3 %v4895_v20 }
  0xce   :  { %v178_v18 = vpop.f32.mrf.mxu0  ;;  %v4812_v19 = vld [vmem:[#allocation2 + $0x18] sm:$0xff]  ;;  %v419_v43 = vpop.f32.mrf.mxu1 }
  0xcf   :  { %v179_v21 = vadd.f32 %v5399_v37, %v178_v18  ;;  %v4800_v22 = vld [vmem:[#allocation2 + $0x70] sm:$0xff]  ;;  %680 = vmatmul.bf16.gmra.mxu2 %v4812_v19  ;;  %v420_v45 = vadd.f32 %v5399_v37, %v419_v43  ;;  %v4837_v15 = vld [vmem:[#allocation2 + $0x18] sm:$0xff] }
  0xd0   :  { %797 = vmatmul.bf16.gmra.mxu3 %v4800_v22 }
  0xd1   :  { %v215_v23 = vmul.f32 0.2, %v179_v21  ;;  %v456_v51 = vmul.f32 0.2, %v420_v45 }
  0xd3   :  { %v235_v27 = vmax.f32 %v179_v21, %v215_v23  ;;  %v476_v53 = vmax.f32 %v420_v45, %v456_v51  ;;  %v778_v45 = vpop.f32.mrf.mxu3 }
  0xd5   :  { %v5083_v28 = vpack.c.bf16 %v235_v27, %v234_v26  ;;  %v5133_v59 = vpack.c.bf16 %v476_v53, %v475_v49  ;;  %v4894_v26 = vld [vmem:[%s6149_s2 + $0xd0] sm:$0xff] }
  0xd6   :  { %v181_v35 = vpop.f32.mrf.mxu0  ;;  %v422_v1 = vpop.f32.mrf.mxu1  ;;  %1683 = vmatpush.bf16.msra.mxu3 %v4894_v26 }
  0xd7   :  { %5213 = vst [vmem:[#allocation2 + $0x20] sm:$0xff] %v5083_v28   ;;  %v182_v38 = vadd.f32 %v5399_v37, %v181_v35  ;;  %v423_v3 = vadd.f32 %v5399_v37, %v422_v1  ;;  %v4881_v35 = vld [vmem:[%s6149_s2 + $0x90] sm:$0xff] }
  0xd8   :  { %5223 = vst [vmem:[#allocation2 + $0x78] sm:$0xff] %v5133_v59   ;;  %1535 = vmatpush.bf16.msra.mxu2 %v4881_v35 }
  0xd9   :  { %v216_v40 = vmul.f32 0.2, %v182_v38  ;;  %v457_v7 = vmul.f32 0.2, %v423_v3 }
  0xdb   :  { %v236_v48 = vmax.f32 %v182_v38, %v216_v40  ;;  %v477_v17 = vmax.f32 %v423_v3, %v457_v7  ;;  %v4824_v40 = vld [vmem:[#allocation2 + $0x68] sm:$0xff]  ;;  %v780_v59 = vpop.f32.mrf.mxu3  ;;  %v4825_v3 = vld [vmem:[#allocation2 + $0x70] sm:$0xff] }
  0xdc   :  { %1536 = vmatpush.bf16.msra.mxu2 %v4880_v54 }
  0xde   :  { %v4813_v29 = vld [vmem:[#allocation2 + $0x20] sm:$0xff]  ;;  %v183_v42 = vpop.f32.mrf.mxu0  ;;  %v424_v10 = vpop.f32.mrf.mxu1 }
  0xdf   :  { %685 = vmatmul.bf16.gmra.mxu2 %v4813_v29  ;;  %v184_v44 = vadd.f32 %v5399_v37, %v183_v42  ;;  %v4848_v11 = vld [vmem:[#allocation2 + $0x78] sm:$0xff]  ;;  %v425_v14 = vadd.f32 %v5399_v37, %v424_v10  ;;  %v4893_v29 = vld [vmem:[%s6149_s2 + $0xc8] sm:$0xff] }
  0xe0   :  { %1063 = vmatmul.bf16.vlgmr.msrb.gmra.mxu3 %v4835_v30  ;;  %1400 = vmatmul.bf16.vlgmr.msrb.gmra.mxu1 %v4848_v11 }
  0xe1   :  { %v217_v50 = vmul.f32 0.2, %v184_v44  ;;  %v458_v19 = vmul.f32 0.2, %v425_v14  ;;  %1684 = vmatpush.bf16.msra.mxu3 %v4893_v29  ;;  %1537 = vmatpush.bf16.msra.mxu2 %v4879_v62 }
  0xe3   :  { %v237_v52 = vmax.f32 %v184_v44, %v217_v50  ;;  %v478_v22 = vmax.f32 %v425_v14, %v458_v19  ;;  %v4838_v44 = vld [vmem:[#allocation2 + $0x20] sm:$0xff] }
  0xe5   :  { %v5088_v58 = vpack.c.bf16 %v237_v52, %v236_v48  ;;  %v5138_v24 = vpack.c.bf16 %v478_v22, %v477_v17  ;;  %1685 = vmatpush.bf16.msra.mxu3 %v4892_v34 }
  0xe6   :  { %v186_v0 = vpop.f32.mrf.mxu0  ;;  %v427_v28 = vpop.f32.mrf.mxu1 }
  0xe7   :  { %5214 = vst [vmem:[#allocation2 + $0x28] sm:$0xff] %v5088_v58   ;;  %v187_v2 = vadd.f32 %v5399_v37, %v186_v0  ;;  %v428_v31 = vadd.f32 %v5399_v37, %v427_v28 }
  0xe8   :  { %5224 = vst [vmem:[#allocation2 + $0x80] sm:$0xff] %v5138_v24  }
  0xe9   :  { %v218_v6 = vmul.f32 0.2, %v187_v2  ;;  %v459_v33 = vmul.f32 0.2, %v428_v31 }
  0xeb   :  { %v238_v16 = vmax.f32 %v187_v2, %v218_v6 }
  0xee   :  { %v4861_v8 = vld [vmem:[#allocation2 + $0x28] sm:$0xff]  ;;  %v188_v9 = vpop.f32.mrf.mxu0  ;;  %v429_v38 = vpop.f32.mrf.mxu1 }
  0xef   :  { %915 = vmatmul.bf16.vlgmr.msrb.gmra.mxu2 %v4822_v46  ;;  %v189_v13 = vadd.f32 %v5399_v37, %v188_v9  ;;  %1288 = vmatmul.bf16.vlgmr.msrb.gmra.mxu0 %v4861_v8  ;;  %v430_v42 = vadd.f32 %v5399_v37, %v429_v38  ;;  %v4849_v43 = vld [vmem:[#allocation2 + $0x80] sm:$0xff]  ;;  %v4839_v63 = vld [vmem:[#allocation2 + $0x28] sm:$0xff] }
  0xf0   :  { %1068 = vmatmul.bf16.gmra.mxu3 %v4836_v47  ;;  %v479_v47 = vmax.f32 %v428_v31, %v459_v33  ;;  %1405 = vmatmul.bf16.gmra.mxu1 %v4849_v43  ;;  %v4826_v31 = vld [vmem:[#allocation2 + $0x78] sm:$0xff] }
  0xf1   :  { %v219_v18 = vmul.f32 0.2, %v189_v13  ;;  %v460_v49 = vmul.f32 0.2, %v430_v42 }
  0xf3   :  { %v239_v21 = vmax.f32 %v189_v13, %v219_v18  ;;  %v480_v51 = vmax.f32 %v430_v42, %v460_v49 }
  0xf5   :  { %v5093_v23 = vpack.c.bf16 %v239_v21, %v238_v16  ;;  %v5143_v53 = vpack.c.bf16 %v480_v51, %v479_v47 }
  0xf6   :  { %v191_v27 = vpop.f32.mrf.mxu0  ;;  %v432_v56 = vpop.f32.mrf.mxu1 }
  0xf7   :  { %5215 = vst [vmem:[#allocation2 + $0x30] sm:$0xff] %v5093_v23   ;;  %v192_v30 = vadd.f32 %v5399_v37, %v191_v27  ;;  %v433_v58 = vadd.f32 %v5399_v37, %v432_v56 }
  0xf8   :  { %5225 = vst [vmem:[#allocation2 + $0x88] sm:$0xff] %v5143_v53  }
  0xf9   :  { %v220_v32 = vmul.f32 0.2, %v192_v30  ;;  %v461_v61 = vmul.f32 0.2, %v433_v58 }
  0xfb   :  { %v240_v46 = vmax.f32 %v192_v30, %v220_v32  ;;  %v481_v8 = vmax.f32 %v433_v58, %v461_v61 }
  0xfe   :  { %v193_v36 = vpop.f32.mrf.mxu0  ;;  %v4862_v39 = vld [vmem:[#allocation2 + $0x30] sm:$0xff]  ;;  %v434_v1 = vpop.f32.mrf.mxu1 }
  0xff   :  { %920 = vmatmul.bf16.gmra.mxu2 %v4823_v12  ;;  %v194_v41 = vadd.f32 %v5399_v37, %v193_v36  ;;  %1293 = vmatmul.bf16.gmra.mxu0 %v4862_v39  ;;  %v435_v5 = vadd.f32 %v5399_v37, %v434_v1  ;;  %v4850_v6 = vld [vmem:[#allocation2 + $0x88] sm:$0xff]  ;;  %v4887_v27 = vld [vmem:[#allocation2 + $0x30] sm:$0xff] }
 0x100   :  { %1073 = vmatmul.bf16.gmra.mxu3 %v4837_v15  ;;  %1410 = vmatmul.bf16.gmra.mxu1 %v4850_v6  ;;  %v4925_v6 = vld [vmem:[%s6149_s2 + $0x178] sm:$0xff] }
 0x101   :  { %v221_v48 = vmul.f32 0.2, %v194_v41  ;;  %v462_v10 = vmul.f32 0.2, %v435_v5  ;;  %1904 = vmatpush.bf16.msra.mxu0 %v4925_v6 }
 0x103   :  { %v241_v50 = vmax.f32 %v194_v41, %v221_v48  ;;  %v482_v12 = vmax.f32 %v435_v5, %v462_v10 }
 0x105   :  { %v5098_v52 = vpack.c.bf16 %v241_v50, %v240_v46  ;;  %v5148_v17 = vpack.c.bf16 %v482_v12, %v481_v8  ;;  %v4911_v12 = vld [vmem:[%s6149_s2 + $0x130] sm:$0xff] }
 0x106   :  { %v196_v55 = vpop.f32.mrf.mxu0  ;;  %v437_v19 = vpop.f32.mrf.mxu1 }
 0x107   :  { %5216 = vst [vmem:[#allocation2 + $0x38] sm:$0xff] %v5098_v52   ;;  %v197_v57 = vadd.f32 %v5399_v37, %v196_v55  ;;  %v438_v21 = vadd.f32 %v5399_v37, %v437_v19  ;;  %v4874_v52 = vld [vmem:[#allocation2 + $0x80] sm:$0xff] }
 0x108   :  { %5226 = vst [vmem:[#allocation2 + $0x90] sm:$0xff] %v5148_v17   ;;  %v4922_v19 = vld [vmem:[%s6149_s2 + $0x160] sm:$0xff] }
 0x109   :  { %v222_v60 = vmul.f32 0.2, %v197_v57  ;;  %v463_v26 = vmul.f32 0.2, %v438_v21 }
 0x10b   :  { %v242_v7 = vmax.f32 %v197_v57, %v222_v60  ;;  %v483_v36 = vmax.f32 %v438_v21, %v463_v26 }
 0x10e   :  { %v198_v0 = vpop.f32.mrf.mxu0  ;;  %v4863_v2 = vld [vmem:[#allocation2 + $0x38] sm:$0xff]  ;;  %v439_v29 = vpop.f32.mrf.mxu1 }
 0x10f   :  { %925 = vmatmul.bf16.gmra.mxu2 %v4824_v40  ;;  %v199_v4 = vadd.f32 %v5399_v37, %v198_v0  ;;  %1298 = vmatmul.bf16.gmra.mxu0 %v4863_v2  ;;  %v440_v33 = vadd.f32 %v5399_v37, %v439_v29  ;;  %v4851_v34 = vld [vmem:[#allocation2 + $0x90] sm:$0xff]  ;;  %v4888_v50 = vld [vmem:[#allocation2 + $0x38] sm:$0xff]  ;;  %v4875_v2 = vld [vmem:[#allocation2 + $0x88] sm:$0xff] }
 0x110   :  { %1078 = vmatmul.bf16.gmra.mxu3 %v4838_v44  ;;  %1415 = vmatmul.bf16.gmra.mxu1 %v4851_v34  ;;  %v4876_v21 = vld [vmem:[#allocation2 + $0x90] sm:$0xff]  ;;  %v4936_v34 = vld [vmem:[%s6149_s2 + $0x1a8] sm:$0xff] }
 0x111   :  { %v223_v9 = vmul.f32 0.2, %v199_v4  ;;  %v464_v39 = vmul.f32 0.2, %v440_v33  ;;  %v4920_v29 = vld [vmem:[%s6149_s2 + $0x150] sm:$0xff] }
 0x113   :  { %v243_v11 = vmax.f32 %v199_v4, %v223_v9  ;;  %v484_v41 = vmax.f32 %v440_v33, %v464_v39  ;;  %v4906_v33 = vld [vmem:[%s6149_s2 + $0x108] sm:$0xff]  ;;  %v4918_v39 = vld [vmem:[%s6149_s2 + $0x140] sm:$0xff] }
 0x115   :  { %v5103_v16 = vpack.c.bf16 %v243_v11, %v242_v7  ;;  %v5153_v46 = vpack.c.bf16 %v484_v41, %v483_v36  ;;  %v4912_v7 = vld [vmem:[%s6149_s2 + $0x138] sm:$0xff]  ;;  %v4924_v11 = vld [vmem:[%s6149_s2 + $0x170] sm:$0xff]  ;;  %v4935_v41 = vld [vmem:[%s6149_s2 + $0x1a0] sm:$0xff] }
 0x116   :  { %v201_v18 = vpop.f32.mrf.mxu0  ;;  %2016 = vmatpush.bf16.msra.mxu1 %v4912_v7  ;;  %1905 = vmatpush.bf16.msra.mxu0 %v4924_v11  ;;  %v4946_v11 = vld [vmem:[%s6149_s2 + $0x1d0] sm:$0xff] }
 0x117   :  { %5217 = vst [vmem:[#allocation2 + $0x40] sm:$0xff] %v5103_v16   ;;  %v202_v20 = vadd.f32 %v5399_v37, %v201_v18 }
 0x118   :  { %5227 = vst [vmem:[#allocation2 + $0x98] sm:$0xff] %v5153_v46   ;;  %v4951_v46 = vld [vmem:[%s6149_s2 + $0x1f8] sm:$0xff] }
 0x119   :  { %v224_v25 = vmul.f32 0.2, %v202_v20  ;;  %v442_v57 = vpop.f32.mrf.mxu1  ;;  %2302 = vmatpush.bf16.msrb.mxu3 %v4951_v46 }
 0x11a   :  { %v443_v58 = vadd.f32 %v5399_v37, %v442_v57  ;;  %2017 = vmatpush.bf16.msra.mxu1 %v4911_v12 }
 0x11b   :  { %v244_v35 = vmax.f32 %v202_v20, %v224_v25  ;;  %v4909_v20 = vld [vmem:[%s6149_s2 + $0x120] sm:$0xff]  ;;  %v4938_v25 = vld [vmem:[%s6149_s2 + $0x1b8] sm:$0xff] }
 0x11c   :  { %v465_v60 = vmul.f32 0.2, %v443_v58  ;;  %2154 = vmatpush.bf16.msrb.mxu2 %v4938_v25 }
 0x11e   :  { %v203_v28 = vpop.f32.mrf.mxu0  ;;  %v4864_v30 = vld [vmem:[#allocation2 + $0x40] sm:$0xff] }
 0x11f   :  { %930 = vmatmul.bf16.gmra.mxu2 %v4825_v3  ;;  %v204_v32 = vadd.f32 %v5399_v37, %v203_v28  ;;  %1303 = vmatmul.bf16.gmra.mxu0 %v4864_v30  ;;  %v4852_v53 = vld [vmem:[#allocation2 + $0x98] sm:$0xff]  ;;  %v4889_v0 = vld [vmem:[#allocation2 + $0x40] sm:$0xff]  ;;  %v485_v3 = vmax.f32 %v443_v58, %v465_v60  ;;  %v4907_v30 = vld [vmem:[%s6149_s2 + $0x110] sm:$0xff] }
 0x120   :  { %1083 = vmatmul.bf16.gmra.mxu3 %v4839_v63  ;;  %1420 = vmatmul.bf16.gmra.mxu1 %v4852_v53 }
 0x121   :  { %v225_v38 = vmul.f32 0.2, %v204_v32  ;;  %v444_v63 = vpop.f32.mrf.mxu1 }
 0x122   :  { %v666_v13 = vpop.f32.mrf.mxu2  ;;  %v445_v1 = vadd.f32 %v5399_v37, %v444_v63 }
 0x123   :  { %v5601_v14 = vadd.f32 %v778_v45, %v666_v13  ;;  %v783_v15 = vpop.f32.mrf.mxu3  ;;  %v245_v40 = vmax.f32 %v204_v32, %v225_v38  ;;  %v4923_v13 = vld [vmem:[%s6149_s2 + $0x168] sm:$0xff]  ;;  %v4891_v38 = vld [vmem:[#allocation2 + $0x50] sm:$0xff] }
 0x124   :  { %v466_v4 = vmul.f32 0.2, %v445_v1  ;;  %1906 = vmatpush.bf16.msra.mxu0 %v4923_v13  ;;  %v4919_v32 = vld [vmem:[%s6149_s2 + $0x148] sm:$0xff] }
 0x125   :  { %v5108_v45 = vpack.c.bf16 %v245_v40, %v244_v35  ;;  %v4905_v40 = vld [vmem:[%s6149_s2 + $0x100] sm:$0xff] }
 0x126   :  { %v486_v5 = vmax.f32 %v445_v1, %v466_v4  ;;  %v4948_v1 = vld [vmem:[%s6149_s2 + $0x1e0] sm:$0xff] }
 0x127   :  { %5218 = vst [vmem:[#allocation2 + $0x48] sm:$0xff] %v5108_v45   ;;  %v4934_v45 = vld [vmem:[%s6149_s2 + $0x198] sm:$0xff] }
 0x128   :  { %v5158_v9 = vpack.c.bf16 %v486_v5, %v485_v3  ;;  %1907 = vmatpush.bf16.msra.mxu0 %v4922_v19 }
 0x12a   :  { %v668_v22 = vpop.f32.mrf.mxu2  ;;  %5228 = vst [vmem:[#allocation2 + $0xa0] sm:$0xff] %v5158_v9  }
 0x12b   :  { %v5605_v23 = vadd.f32 %v780_v59, %v668_v22  ;;  %v785_v24 = vpop.f32.mrf.mxu3  ;;  %v4921_v22 = vld [vmem:[%s6149_s2 + $0x158] sm:$0xff] }
 0x12c   :  { %1908 = vmatpush.bf16.msra.mxu0 %v4921_v22 }
 0x12e   :  { %v4865_v51 = vld [vmem:[#allocation2 + $0x48] sm:$0xff] }
 0x12f   :  { %935 = vmatmul.bf16.gmra.mxu2 %v4826_v31  ;;  %1308 = vmatmul.bf16.gmra.mxu0 %v4865_v51  ;;  %v4890_v18 = vld [vmem:[#allocation2 + $0x48] sm:$0xff]  ;;  %v4937_v31 = vld [vmem:[%s6149_s2 + $0x1b0] sm:$0xff] }
 0x130   :  { %1686 = vmatmul.bf16.vlgmr.msra.gmra.mxu3 %v4887_v27  ;;  %1909 = vmatpush.bf16.msra.mxu0 %v4920_v29  ;;  %v4933_v51 = vld [vmem:[%s6149_s2 + $0x190] sm:$0xff] }
 0x131   :  { %2155 = vmatpush.bf16.msrb.mxu2 %v4937_v31  ;;  %v4878_v63 = vld [vmem:[#allocation2 + $0xa0] sm:$0xff] }
 0x132   :  { %v671_v42 = vpop.f32.mrf.mxu2 }
 0x133   :  { %v5609_v43 = vadd.f32 %v783_v15, %v671_v42  ;;  %v788_v44 = vpop.f32.mrf.mxu3  ;;  %v4910_v15 = vld [vmem:[%s6149_s2 + $0x128] sm:$0xff]  ;;  %v4877_v42 = vld [vmem:[#allocation2 + $0x98] sm:$0xff] }
 0x134   :  { %2018 = vmatpush.bf16.msra.mxu1 %v4910_v15  ;;  %1910 = vmatpush.bf16.msra.mxu0 %v4919_v32  ;;  %v4945_v15 = vld [vmem:[%s6149_s2 + $0x1c8] sm:$0xff] }
 0x135   :  { %2156 = vmatpush.bf16.msrb.mxu2 %v4936_v34 }
 0x138   :  { %2019 = vmatpush.bf16.msra.mxu1 %v4909_v20  ;;  %1911 = vmatpush.bf16.msra.mxu0 %v4918_v39 }
 0x139   :  { %2157 = vmatpush.bf16.msrb.mxu2 %v4935_v41 }
 0x13a   :  { %v673_v47 = vpop.f32.mrf.mxu2 }
 0x13b   :  { %v5611_v48 = vadd.f32 %v785_v24, %v673_v47  ;;  %v790_v49 = vpop.f32.mrf.mxu3  ;;  %v4908_v24 = vld [vmem:[%s6149_s2 + $0x118] sm:$0xff] }
 0x13c   :  { %2020 = vmatpush.bf16.msra.mxu1 %v4908_v24 }
 0x13d   :  { %2158 = vmatpush.bf16.msrb.mxu2 %v4934_v45 }
 0x13f   :  { %1538 = vmatmul.bf16.vlgmr.msra.gmra.mxu2 %v4874_v52  ;;  %v4950_v52 = vld [vmem:[%s6149_s2 + $0x1f0] sm:$0xff] }
 0x140   :  { %1691 = vmatmul.bf16.gmra.mxu3 %v4888_v50  ;;  %2021 = vmatpush.bf16.msra.mxu1 %v4907_v30 }
 0x141   :  { %2303 = vmatpush.bf16.msrb.mxu3 %v4950_v52  ;;  %2159 = vmatpush.bf16.msrb.mxu2 %v4933_v51 }
 0x142   :  { %v676_v54 = vpop.f32.mrf.mxu2 }
 0x143   :  { %v5613_v55 = vadd.f32 %v788_v44, %v676_v54  ;;  %v793_v56 = vpop.f32.mrf.mxu3  ;;  %v4900_v44 = vld [vmem:[#allocation3 + $0x28] sm:$0xff]  ;;  %v5707_v54 = vld [vmem:[%s6147_s5 + $0x1] ss:$0 sm:$0xff] }
 0x144   :  { %2022 = vmatpush.bf16.msra.mxu1 %v4906_v33 }
 0x148   :  { %2023 = vmatpush.bf16.msra.mxu1 %v4905_v40 }
 0x14a   :  { %v678_v59 = vpop.f32.mrf.mxu2 }
 0x14b   :  { %v5616_v61 = vadd.f32 %v790_v49, %v678_v59  ;;  %v5618_v62 = vpop.f32.mrf.mxu3  ;;  %2024 = vmatmul.bf16.vlgmr.msra.gmra.mxu1 %v4900_v44 }
 0x14f   :  { %1543 = vmatmul.bf16.gmra.mxu2 %v4875_v2 }
 0x150   :  { %1696 = vmatmul.bf16.gmra.mxu3 %v4889_v0  ;;  %v4931_v0 = vld [vmem:[%s6149_s2 + $0x180] sm:$0xff] }
 0x152   :  { %v681_v8 = vpop.f32.mrf.mxu2 }
 0x153   :  { %v5627_v10 = vadd.f32 %v793_v56, %v681_v8  ;;  %v798_v37 = vpop.f32.mrf.mxu3  ;;  %v4949_v56 = vld [vmem:[%s6149_s2 + $0x1e8] sm:$0xff] }
 0x154   :  { %2304 = vmatpush.bf16.msrb.mxu3 %v4949_v56 }
 0x158   :  { %2305 = vmatpush.bf16.msrb.mxu3 %v4948_v1 }
 0x15a   :  { %v5641_v16 = vpop.f32.mrf.mxu2 }
 0x15b   :  { %v5643_v17 = vpop.f32.mrf.mxu3 }
 0x15f   :  { %1548 = vmatmul.bf16.gmra.mxu2 %v4876_v21  ;;  %v4944_v21 = vld [vmem:[%s6149_s2 + $0x1c0] sm:$0xff] }
 0x160   :  { %1701 = vmatmul.bf16.gmra.mxu3 %v4890_v18 }
 0x162   :  { %v686_v26 = vpop.f32.mrf.mxu2 }
 0x163   :  { %v5660_v27 = vadd.f32 %v798_v37, %v686_v26  ;;  %v1064_v28 = vpop.f32.mrf.mxu3 }
 0x16a   :  { %v5680_v35 = vpop.f32.mrf.mxu2 }
 0x16b   :  { %v1066_v36 = vpop.f32.mrf.mxu3 }
 0x16f   :  { %1553 = vmatmul.bf16.gmra.mxu2 %v4877_v42 }
 0x170   :  { %1706 = vmatmul.bf16.gmra.mxu3 %v4891_v38 }
 0x172   :  { %v916_v47 = vpop.f32.mrf.mxu2 }
 0x173   :  { %v941_v49 = vadd.f32 %v916_v47, %v5601_v14  ;;  %v1069_v50 = vpop.f32.mrf.mxu3  ;;  %v4932_v14 = vld [vmem:[%s6149_s2 + $0x188] sm:$0xff] }
 0x174   :  { %2160 = vmatpush.bf16.msrb.mxu2 %v4932_v14 }
 0x175   :  { %v1089_v53 = vadd.f32 %v1064_v28, %v941_v49 }
 0x177   :  { %v1100_v58 = vadd.f32 %v5707_v54, %v1089_v53 }
 0x178   :  { %2161 = vmatpush.bf16.msrb.mxu2 %v4931_v0 }
 0x179   :  { %v1110_v3 = vmul.f32 0.2, %v1100_v58 }
 0x17a   :  { %v918_v57 = vpop.f32.mrf.mxu2 }
 0x17b   :  { %v942_v59 = vadd.f32 %v918_v57, %v5605_v23  ;;  %v1071_v60 = vpop.f32.mrf.mxu3  ;;  %v4947_v23 = vld [vmem:[%s6149_s2 + $0x1d8] sm:$0xff]  ;;  %v1120_v7 = vmax.f32 %v1100_v58, %v1110_v3  ;;  %v1289_v57 = vpop.f32.mrf.mxu0 }
 0x17c   :  { %2306 = vmatpush.bf16.msrb.mxu3 %v4947_v23 }
 0x17d   :  { %v1090_v2 = vadd.f32 %v1066_v36, %v942_v59 }
 0x17f   :  { %v1101_v4 = vadd.f32 %v5707_v54, %v1090_v2  ;;  %1558 = vmatmul.bf16.gmra.mxu2 %v4878_v63  ;;  %v1401_v63 = vpop.f32.mrf.mxu1 }
 0x180   :  { %2307 = vmatpush.bf16.msrb.mxu3 %v4946_v11  ;;  %v801_v11 = vadd.f32 %v5643_v17, %v5680_v35 }
 0x181   :  { %v1111_v5 = vmul.f32 0.2, %v1101_v4 }
 0x182   :  { %v921_v6 = vpop.f32.mrf.mxu2 }
 0x183   :  { %v1121_v8 = vmax.f32 %v1101_v4, %v1111_v5  ;;  %v943_v9 = vadd.f32 %v921_v6, %v5609_v43  ;;  %v1074_v37 = vpop.f32.mrf.mxu3 }
 0x184   :  { %2308 = vmatpush.bf16.msrb.mxu3 %v4945_v15 }
 0x185   :  { %v5163_v12 = vpack.c.bf16 %v1121_v8, %v1120_v7  ;;  %v1091_v13 = vadd.f32 %v1069_v50, %v943_v9  ;;  %v1291_v7 = vpop.f32.mrf.mxu0 }
 0x187   :  { %5164 = vst [vmem:[#allocation3] sm:$0xff] %v5163_v12   ;;  %v1102_v19 = vadd.f32 %v5707_v54, %v1091_v13  ;;  %v1403_v9 = vpop.f32.mrf.mxu1 }
 0x188   :  { %2309 = vmatpush.bf16.msrb.mxu3 %v4944_v21 }
 0x189   :  { %v1112_v25 = vmul.f32 0.2, %v1102_v19 }
 0x18a   :  { %v923_v18 = vpop.f32.mrf.mxu2 }
 0x18b   :  { %v944_v20 = vadd.f32 %v923_v18, %v5611_v48  ;;  %v1076_v43 = vpop.f32.mrf.mxu3  ;;  %v1122_v30 = vmax.f32 %v1102_v19, %v1112_v25  ;;  %v1402_v25 = vadd.f32 %v1401_v63, %v1289_v57 }
 0x18d   :  { %v1092_v22 = vadd.f32 %v1071_v60, %v944_v20  ;;  %v1294_v21 = vpop.f32.mrf.mxu0 }
 0x18e   :  { %v4913_v24 = vld [vmem:[#allocation3] sm:$0xff] }
 0x18f   :  { %v1103_v26 = vadd.f32 %v5707_v54, %v1092_v22  ;;  %1912 = vmatmul.bf16.vlgmr.msra.gmra.mxu0 %v4913_v24  ;;  %v1406_v24 = vpop.f32.mrf.mxu1 }
 0x191   :  { %v1113_v28 = vmul.f32 0.2, %v1103_v26 }
 0x192   :  { %v926_v29 = vpop.f32.mrf.mxu2 }
 0x193   :  { %v1123_v31 = vmax.f32 %v1103_v26, %v1113_v28  ;;  %v945_v32 = vadd.f32 %v926_v29, %v5613_v55  ;;  %v1079_v33 = vpop.f32.mrf.mxu3 }
 0x195   :  { %v5168_v48 = vpack.c.bf16 %v1123_v31, %v1122_v30  ;;  %v1093_v34 = vadd.f32 %v1074_v37, %v945_v32 }
 0x197   :  { %5229 = vst [vmem:[#allocation3 + $0x30] sm:$0xff] %v5168_v48   ;;  %v1104_v38 = vadd.f32 %v5707_v54, %v1093_v34  ;;  %v1296_v48 = vpop.f32.mrf.mxu0  ;;  %v1408_v34 = vpop.f32.mrf.mxu1 }
 0x198   :  { %v1409_v57 = vadd.f32 %v1408_v34, %v1296_v48 }
 0x199   :  { %v1114_v45 = vmul.f32 0.2, %v1104_v38 }
 0x19a   :  { %v928_v36 = vpop.f32.mrf.mxu2 }
 0x19b   :  { %v946_v39 = vadd.f32 %v928_v36, %v5616_v61  ;;  %v1081_v40 = vpop.f32.mrf.mxu3  ;;  %v1124_v49 = vmax.f32 %v1104_v38, %v1114_v45  ;;  %v796_v61 = vadd.f32 %v5618_v62, %v5641_v16 }
 0x19d   :  { %v1094_v41 = vadd.f32 %v1076_v43, %v946_v39 }
 0x19e   :  { %v4901_v42 = vld [vmem:[#allocation3 + $0x30] sm:$0xff] }
 0x19f   :  { %v4926_v44 = vld [vmem:[#allocation3 + $0x30] sm:$0xff]  ;;  %v1105_v46 = vadd.f32 %v5707_v54, %v1094_v41  ;;  %2029 = vmatmul.bf16.gmra.mxu1 %v4901_v42 }
 0x1a0   :  { %2162 = vmatmul.bf16.vlgmr.msrb.gmra.mxu2 %v4926_v44 }
 0x1a1   :  { %v1115_v47 = vmul.f32 0.2, %v1105_v46 }
 0x1a2   :  { %v931_v55 = vpop.f32.mrf.mxu2 }
 0x1a3   :  { %v1125_v50 = vmax.f32 %v1105_v46, %v1115_v47  ;;  %v947_v51 = vadd.f32 %v931_v55, %v5627_v10  ;;  %v1084_v52 = vpop.f32.mrf.mxu3  ;;  %v1407_v47 = vadd.f32 %v1406_v24, %v1294_v21 }
 0x1a5   :  { %v5173_v53 = vpack.c.bf16 %v1125_v50, %v1124_v49  ;;  %v1095_v14 = vadd.f32 %v1079_v33, %v947_v51  ;;  %v1404_v33 = vadd.f32 %v1403_v9, %v1291_v7  ;;  %v1299_v50 = vpop.f32.mrf.mxu0 }
 0x1a7   :  { %5230 = vst [vmem:[#allocation3 + $0x8] sm:$0xff] %v5173_v53   ;;  %v1106_v58 = vadd.f32 %v5707_v54, %v1095_v14  ;;  %v1411_v14 = vpop.f32.mrf.mxu1 }
 0x1a9   :  { %v1116_v3 = vmul.f32 0.2, %v1106_v58 }
 0x1aa   :  { %v933_v56 = vpop.f32.mrf.mxu2 }
 0x1ab   :  { %v948_v59 = vadd.f32 %v933_v56, %v796_v61  ;;  %v1086_v60 = vpop.f32.mrf.mxu3  ;;  %v1126_v5 = vmax.f32 %v1106_v58, %v1116_v3 }
 0x1ad   :  { %v1096_v0 = vadd.f32 %v1081_v40, %v948_v59 }
 0x1ae   :  { %v4914_v1 = vld [vmem:[#allocation3 + $0x8] sm:$0xff] }
 0x1af   :  { %v4939_v2 = vld [vmem:[#allocation3 + $0x8] sm:$0xff]  ;;  %v1107_v10 = vadd.f32 %v5707_v54, %v1096_v0  ;;  %1917 = vmatmul.bf16.gmra.mxu0 %v4914_v1  ;;  %v1301_v0 = vpop.f32.mrf.mxu0 }
 0x1b0   :  { %2310 = vmatmul.bf16.vlgmr.msrb.gmra.mxu3 %v4939_v2  ;;  %v1413_v2 = vpop.f32.mrf.mxu1 }
 0x1b1   :  { %v1117_v4 = vmul.f32 0.2, %v1107_v10 }
 0x1b2   :  { %v936_v23 = vpop.f32.mrf.mxu2 }
 0x1b3   :  { %v1127_v6 = vmax.f32 %v1107_v10, %v1117_v4  ;;  %v949_v62 = vadd.f32 %v936_v23, %v5660_v27  ;;  %v1687_v16 = vpop.f32.mrf.mxu3 }
 0x1b5   :  { %v5178_v8 = vpack.c.bf16 %v1127_v6, %v1126_v5  ;;  %v1097_v37 = vadd.f32 %v1084_v52, %v949_v62  ;;  %v1412_v5 = vadd.f32 %v1411_v14, %v1299_v50 }
 0x1b7   :  { %5231 = vst [vmem:[#allocation3 + $0x38] sm:$0xff] %v5178_v8   ;;  %v1108_v13 = vadd.f32 %v5707_v54, %v1097_v37 }
 0x1b9   :  { %v1118_v22 = vmul.f32 0.2, %v1108_v13 }
 0x1ba   :  { %v938_v12 = vpop.f32.mrf.mxu2 }
 0x1bb   :  { %v950_v15 = vadd.f32 %v938_v12, %v801_v11  ;;  %v1689_v18 = vpop.f32.mrf.mxu3  ;;  %v1128_v29 = vmax.f32 %v1108_v13, %v1118_v22  ;;  %v1304_v11 = vpop.f32.mrf.mxu0 }
 0x1bc   :  { %v1416_v13 = vpop.f32.mrf.mxu1 }
 0x1bd   :  { %v1098_v19 = vadd.f32 %v1086_v60, %v950_v15  ;;  %v1414_v15 = vadd.f32 %v1413_v2, %v1301_v0  ;;  %v4958_v2 = vld [vmem:[%s6150_s3 + $0x30] sm:$0xff] }
 0x1be   :  { %v4902_v20 = vld [vmem:[#allocation3 + $0x38] sm:$0xff] }
 0x1bf   :  { %v4927_v43 = vld [vmem:[#allocation3 + $0x38] sm:$0xff]  ;;  %v1109_v27 = vadd.f32 %v5707_v54, %v1098_v19  ;;  %2034 = vmatmul.bf16.gmra.mxu1 %v4902_v20 }
 0x1c0   :  { %2167 = vmatmul.bf16.gmra.mxu2 %v4927_v43 }
 0x1c1   :  { %v1119_v26 = vmul.f32 0.2, %v1109_v27 }
 0x1c2   :  { %v1539_v28 = vpop.f32.mrf.mxu2 }
 0x1c3   :  { %v1129_v17 = vmax.f32 %v1109_v27, %v1119_v26  ;;  %v1564_v35 = vadd.f32 %v1539_v28, %v1402_v25  ;;  %v1692_v31 = vpop.f32.mrf.mxu3  ;;  %v1417_v26 = vadd.f32 %v1416_v13, %v1304_v11  ;;  %v1306_v28 = vpop.f32.mrf.mxu0  ;;  %v4943_v13 = vld [vmem:[#allocation3 + $0x28] sm:$0xff] }
 0x1c5   :  { %v5183_v30 = vpack.c.bf16 %v1129_v17, %v1128_v29  ;;  %v1712_v32 = vadd.f32 %v1687_v16, %v1564_v35  ;;  %v1418_v17 = vpop.f32.mrf.mxu1 }
 0x1c7   :  { %5232 = vst [vmem:[#allocation3 + $0x10] sm:$0xff] %v5183_v30   ;;  %v1722_v38 = vadd.f32 %v5707_v54, %v1712_v32 }
 0x1c9   :  { %v1732_v44 = vmul.f32 0.2, %v1722_v38 }
 0x1ca   :  { %v1541_v36 = vpop.f32.mrf.mxu2 }
 0x1cb   :  { %v1565_v39 = vadd.f32 %v1541_v36, %v1404_v33  ;;  %v1694_v46 = vpop.f32.mrf.mxu3  ;;  %v1742_v51 = vmax.f32 %v1722_v38, %v1732_v44  ;;  %v1419_v36 = vadd.f32 %v1418_v17, %v1306_v28 }
 0x1cd   :  { %v1713_v40 = vadd.f32 %v1689_v18, %v1565_v39 }
 0x1ce   :  { %v4915_v41 = vld [vmem:[#allocation3 + $0x10] sm:$0xff] }
 0x1cf   :  { %v4940_v42 = vld [vmem:[#allocation3 + $0x10] sm:$0xff]  ;;  %v1723_v45 = vadd.f32 %v5707_v54, %v1713_v40  ;;  %1922 = vmatmul.bf16.gmra.mxu0 %v4915_v41  ;;  %v1309_v41 = vpop.f32.mrf.mxu0 }
 0x1d0   :  { %2315 = vmatmul.bf16.gmra.mxu3 %v4940_v42  ;;  %v1421_v42 = vpop.f32.mrf.mxu1 }
 0x1d1   :  { %v1733_v55 = vmul.f32 0.2, %v1723_v45  ;;  %v1422_v50 = vadd.f32 %v1421_v42, %v1309_v41 }
 0x1d2   :  { %v1544_v49 = vpop.f32.mrf.mxu2 }
 0x1d3   :  { %v1743_v52 = vmax.f32 %v1723_v45, %v1733_v55  ;;  %v1566_v53 = vadd.f32 %v1544_v49, %v1407_v47  ;;  %v1697_v58 = vpop.f32.mrf.mxu3 }
 0x1d5   :  { %v5188_v61 = vpack.c.bf16 %v1743_v52, %v1742_v51  ;;  %v1714_v56 = vadd.f32 %v1692_v31, %v1566_v53 }
 0x1d7   :  { %5233 = vst [vmem:[#allocation3 + $0x40] sm:$0xff] %v5188_v61   ;;  %v1724_v60 = vadd.f32 %v5707_v54, %v1714_v56 }
 0x1d9   :  { %v1734_v4 = vmul.f32 0.2, %v1724_v60 }
 0x1da   :  { %v1546_v59 = vpop.f32.mrf.mxu2 }
 0x1db   :  { %v1567_v63 = vadd.f32 %v1546_v59, %v1409_v57  ;;  %v1744_v16 = vmax.f32 %v1724_v60, %v1734_v4  ;;  %v1699_v9 = vpop.f32.mrf.mxu3  ;;  %v4959_v57 = vld [vmem:[%s6150_s3 + $0x38] sm:$0xff]  ;;  %v1423_v59 = vpop.f32.mrf.mxu1 }
 0x1dc   :  { %2447 = vmatpush.bf16.msrb.mxu0 %v4959_v57 }
 0x1dd   :  { %v1715_v1 = vadd.f32 %v1694_v46, %v1567_v63 }
 0x1de   :  { %v4903_v3 = vld [vmem:[#allocation3 + $0x40] sm:$0xff] }
 0x1df   :  { %v4928_v10 = vld [vmem:[#allocation3 + $0x40] sm:$0xff]  ;;  %v1725_v23 = vadd.f32 %v5707_v54, %v1715_v1  ;;  %2039 = vmatmul.bf16.gmra.mxu1 %v4903_v3 }
 0x1e0   :  { %2172 = vmatmul.bf16.gmra.mxu2 %v4928_v10  ;;  %2448 = vmatpush.bf16.msrb.mxu0 %v4958_v2 }
 0x1e1   :  { %v1735_v6 = vmul.f32 0.2, %v1725_v23 }
 0x1e2   :  { %v1549_v62 = vpop.f32.mrf.mxu2 }
 0x1e3   :  { %v1745_v7 = vmax.f32 %v1725_v23, %v1735_v6  ;;  %v1568_v8 = vadd.f32 %v1549_v62, %v1412_v5  ;;  %v1702_v21 = vpop.f32.mrf.mxu3  ;;  %v4957_v6 = vld [vmem:[%s6150_s3 + $0x28] sm:$0xff] }
 0x1e4   :  { %2449 = vmatpush.bf16.msrb.mxu0 %v4957_v6 }
 0x1e5   :  { %v5193_v37 = vpack.c.bf16 %v1745_v7, %v1744_v16  ;;  %v1716_v12 = vadd.f32 %v1697_v58, %v1568_v8  ;;  %v1311_v58 = vpop.f32.mrf.mxu0  ;;  %v4956_v8 = vld [vmem:[%s6150_s3 + $0x20] sm:$0xff] }
 0x1e6   :  { %v1424_v63 = vadd.f32 %v1423_v59, %v1311_v58 }
 0x1e7   :  { %5234 = vst [vmem:[#allocation3 + $0x18] sm:$0xff] %v5193_v37   ;;  %v1726_v19 = vadd.f32 %v5707_v54, %v1716_v12  ;;  %v4955_v12 = vld [vmem:[%s6150_s3 + $0x18] sm:$0xff] }
 0x1e8   :  { %2450 = vmatpush.bf16.msrb.mxu0 %v4956_v8 }
 0x1e9   :  { %v1736_v24 = vmul.f32 0.2, %v1726_v19 }
 0x1ea   :  { %v1551_v18 = vpop.f32.mrf.mxu2 }
 0x1eb   :  { %v1569_v20 = vadd.f32 %v1551_v18, %v1414_v15  ;;  %v1746_v30 = vmax.f32 %v1726_v19, %v1736_v24  ;;  %v1704_v34 = vpop.f32.mrf.mxu3  ;;  %v4953_v18 = vld [vmem:[%s6150_s3 + $0x8] sm:$0xff]  ;;  %v4952_v19 = vld [vmem:[%s6150_s3] sm:$0xff] }
 0x1ec   :  { %2451 = vmatpush.bf16.msrb.mxu0 %v4955_v12 }
 0x1ed   :  { %v1717_v43 = vadd.f32 %v1699_v9, %v1569_v20 }
 0x1ee   :  { %v4916_v22 = vld [vmem:[#allocation3 + $0x18] sm:$0xff] }
 0x1ef   :  { %v4941_v27 = vld [vmem:[#allocation3 + $0x18] sm:$0xff]  ;;  %v1727_v25 = vadd.f32 %v5707_v54, %v1717_v43  ;;  %1927 = vmatmul.bf16.gmra.mxu0 %v4916_v22  ;;  %v2025_v43 = vpop.f32.mrf.mxu1 }
 0x1f0   :  { %2320 = vmatmul.bf16.gmra.mxu3 %v4941_v27 }
 0x1f1   :  { %v1737_v29 = vmul.f32 0.2, %v1727_v25 }
 0x1f2   :  { %v1554_v35 = vpop.f32.mrf.mxu2 }
 0x1f3   :  { %v1747_v31 = vmax.f32 %v1727_v25, %v1737_v29  ;;  %v1570_v32 = vadd.f32 %v1554_v35, %v1417_v26  ;;  %v1707_v49 = vpop.f32.mrf.mxu3  ;;  %v5791_v29 = vld [vmem:[%s6147_s5 + $0x2] ss:$0 sm:$0xff] }
 0x1f5   :  { %v5198_v33 = vpack.c.bf16 %v1747_v31, %v1746_v30  ;;  %v1718_v48 = vadd.f32 %v1702_v21, %v1570_v32 }
 0x1f7   :  { %5235 = vst [vmem:[#allocation3 + $0x48] sm:$0xff] %v5198_v33   ;;  %v1728_v39 = vadd.f32 %v5707_v54, %v1718_v48  ;;  %v2027_v26 = vpop.f32.mrf.mxu1 }
 0x1f9   :  { %v1738_v47 = vmul.f32 0.2, %v1728_v39 }
 0x1fa   :  { %v1556_v38 = vpop.f32.mrf.mxu2 }
 0x1fb   :  { %v1571_v40 = vadd.f32 %v1556_v38, %v1419_v36  ;;  %v1748_v53 = vmax.f32 %v1728_v39, %v1738_v47  ;;  %v1709_v1 = vpop.f32.mrf.mxu3 }
 0x1fd   :  { %v1719_v44 = vadd.f32 %v1704_v34, %v1571_v40 }
 0x1fe   :  { %v4904_v45 = vld [vmem:[#allocation3 + $0x48] sm:$0xff] }
 0x1ff   :  { %v4929_v46 = vld [vmem:[#allocation3 + $0x48] sm:$0xff]  ;;  %v1729_v55 = vadd.f32 %v5707_v54, %v1719_v44  ;;  %2044 = vmatmul.bf16.gmra.mxu1 %v4904_v45 }
 0x200   :  { %2177 = vmatmul.bf16.gmra.mxu2 %v4929_v46 }
 0x201   :  { %v1739_v51 = vmul.f32 0.2, %v1729_v55 }
 0x202   :  { %v1559_v52 = vpop.f32.mrf.mxu2 }
 0x203   :  { %v1749_v14 = vmax.f32 %v1729_v55, %v1739_v51  ;;  %v1572_v61 = vadd.f32 %v1559_v52, %v1422_v50 }
 0x205   :  { %v5203_v56 = vpack.c.bf16 %v1749_v14, %v1748_v53  ;;  %v1720_v60 = vadd.f32 %v1707_v49, %v1572_v61 }
 0x207   :  { %5236 = vst [vmem:[#allocation3 + $0x20] sm:$0xff] %v5203_v56   ;;  %v1730_v3 = vadd.f32 %v5707_v54, %v1720_v60 }
 0x209   :  { %v1740_v62 = vmul.f32 0.2, %v1730_v3 }
 0x20a   :  { %v1561_v0 = vpop.f32.mrf.mxu2 }
 0x20b   :  { %v1573_v10 = vadd.f32 %v1561_v0, %v1424_v63  ;;  %v1750_v9 = vmax.f32 %v1730_v3, %v1740_v62 }
 0x20c   :  { %v1913_v20 = vpop.f32.mrf.mxu0 }
 0x20d   :  { %v1721_v4 = vadd.f32 %v1709_v1, %v1573_v10  ;;  %v2026_v22 = vadd.f32 %v2025_v43, %v1913_v20 }
 0x20e   :  { %v4917_v23 = vld [vmem:[#allocation3 + $0x20] sm:$0xff] }
 0x20f   :  { %v4942_v5 = vld [vmem:[#allocation3 + $0x20] sm:$0xff]  ;;  %v1731_v16 = vadd.f32 %v5707_v54, %v1721_v4  ;;  %1932 = vmatmul.bf16.gmra.mxu0 %v4917_v23  ;;  %v4954_v54 = vld [vmem:[%s6150_s3 + $0x10] sm:$0xff] }
 0x210   :  { %2325 = vmatmul.bf16.gmra.mxu3 %v4942_v5  ;;  %2452 = vmatpush.bf16.msrb.mxu0 %v4954_v54 }
 0x211   :  { %v1741_v7 = vmul.f32 0.2, %v1731_v16 }
 0x213   :  { %v1751_v37 = vmax.f32 %v1731_v16, %v1741_v7 }
 0x214   :  { %2453 = vmatpush.bf16.msrb.mxu0 %v4953_v18  ;;  %v1915_v25 = vpop.f32.mrf.mxu0 }
 0x215   :  { %v5208_v11 = vpack.c.bf16 %v1751_v37, %v1750_v9  ;;  %v2028_v35 = vadd.f32 %v2027_v26, %v1915_v25 }
 0x217   :  { %5237 = vst [vmem:[#allocation3 + $0x50] sm:$0xff] %v5208_v11  }
 0x218   :  { %2454 = vmatpush.bf16.msrb.mxu0 %v4952_v19 }
 0x21c   :  { %v2030_v42 = vpop.f32.mrf.mxu1 }
 0x21e   :  { %v4930_v15 = vld [vmem:[#allocation3 + $0x50] sm:$0xff] }
 0x21f   :  { %2182 = vmatmul.bf16.gmra.mxu2 %v4930_v15 }
 0x220   :  { %2330 = vmatmul.bf16.gmra.mxu3 %v4943_v13 }
 0x223   :  { %v2163_v21 = vpop.f32.mrf.mxu2 }
 0x224   :  { %v2188_v24 = vadd.f32 %v2163_v21, %v2026_v22  ;;  %v2032_v50 = vpop.f32.mrf.mxu1 }
 0x22b   :  { %v2165_v17 = vpop.f32.mrf.mxu2 }
 0x22c   :  { %v2189_v30 = vadd.f32 %v2165_v17, %v2028_v35  ;;  %v1918_v41 = vpop.f32.mrf.mxu0 }
 0x22d   :  { %v2031_v45 = vadd.f32 %v2030_v42, %v1918_v41 }
 0x233   :  { %v2311_v27 = vpop.f32.mrf.mxu3 }
 0x234   :  { %v2336_v28 = vadd.f32 %v2311_v27, %v2188_v24  ;;  %v1920_v55 = vpop.f32.mrf.mxu0 }
 0x235   :  { %v2033_v52 = vadd.f32 %v2032_v50, %v1920_v55 }
 0x236   :  { %v2347_v31 = vadd.f32 %v5791_v29, %v2336_v28 }
 0x238   :  { %v2357_v48 = vmul.f32 0.2, %v2347_v31 }
 0x23a   :  { %v2367_v38 = vmax.f32 %v2347_v31, %v2357_v48 }
 0x23b   :  { %v2313_v32 = vpop.f32.mrf.mxu3 }
 0x23c   :  { %v2337_v33 = vadd.f32 %v2313_v32, %v2189_v30  ;;  %v2035_v2 = vpop.f32.mrf.mxu1 }
 0x23e   :  { %v2348_v34 = vadd.f32 %v5791_v29, %v2337_v33 }
 0x240   :  { %v2358_v36 = vmul.f32 0.2, %v2348_v34 }
 0x242   :  { %v2368_v39 = vmax.f32 %v2348_v34, %v2358_v36 }
 0x243   :  { %v2168_v44 = vpop.f32.mrf.mxu2 }
 0x244   :  { %v2377_v40 = vpack.c.bf16 %v2368_v39, %v2367_v38  ;;  %v2190_v47 = vadd.f32 %v2168_v44, %v2031_v45  ;;  %v2037_v62 = vpop.f32.mrf.mxu1 }
 0x246   :  { %2455 = vmatmul.bf16.vlgmr.msrb.gmra.mxu0 %v2377_v40 }
 0x24b   :  { %v2170_v51 = vpop.f32.mrf.mxu2 }
 0x24c   :  { %v2191_v53 = vadd.f32 %v2170_v51, %v2033_v52  ;;  %v1923_v1 = vpop.f32.mrf.mxu0 }
 0x24d   :  { %v2036_v10 = vadd.f32 %v2035_v2, %v1923_v1  ;;  %v5806_v1 = vld [vmem:[%s6147_s5 + $0x3] ss:$0 sm:$0xff] }
 0x253   :  { %v2316_v46 = vpop.f32.mrf.mxu3 }
 0x254   :  { %v2338_v49 = vadd.f32 %v2316_v46, %v2190_v47  ;;  %v1925_v5 = vpop.f32.mrf.mxu0 }
 0x255   :  { %v2038_v7 = vadd.f32 %v2037_v62, %v1925_v5 }
 0x256   :  { %v2349_v14 = vadd.f32 %v5791_v29, %v2338_v49 }
 0x258   :  { %v2359_v57 = vmul.f32 0.2, %v2349_v14 }
 0x25a   :  { %v2369_v60 = vmax.f32 %v2349_v14, %v2359_v57 }
 0x25b   :  { %v2318_v61 = vpop.f32.mrf.mxu3 }
 0x25c   :  { %v2339_v56 = vadd.f32 %v2318_v61, %v2191_v53  ;;  %v2040_v43 = vpop.f32.mrf.mxu1 }
 0x25e   :  { %v2350_v58 = vadd.f32 %v5791_v29, %v2339_v56 }
 0x260   :  { %v2360_v59 = vmul.f32 0.2, %v2350_v58 }
 0x262   :  { %v2370_v63 = vmax.f32 %v2350_v58, %v2360_v59 }
 0x263   :  { %v2173_v3 = vpop.f32.mrf.mxu2 }
 0x264   :  { %v2378_v0 = vpack.c.bf16 %v2370_v63, %v2369_v60  ;;  %v2192_v23 = vadd.f32 %v2173_v3, %v2036_v10  ;;  %v2042_v28 = vpop.f32.mrf.mxu1 }
 0x266   :  { %2460 = vmatmul.bf16.gmra.mxu0 %v2378_v0 }
 0x26b   :  { %v2175_v16 = vpop.f32.mrf.mxu2 }
 0x26c   :  { %v2193_v8 = vadd.f32 %v2175_v16, %v2038_v7  ;;  %v1928_v20 = vpop.f32.mrf.mxu0 }
 0x26d   :  { %v2041_v22 = vadd.f32 %v2040_v43, %v1928_v20 }
 0x273   :  { %v2321_v4 = vpop.f32.mrf.mxu3 }
 0x274   :  { %v2340_v6 = vadd.f32 %v2321_v4, %v2192_v23  ;;  %v1930_v25 = vpop.f32.mrf.mxu0 }
 0x275   :  { %v2043_v35 = vadd.f32 %v2042_v28, %v1930_v25  ;;  %v4964_v28 = vld [vmem:[%s6151_s4 + $0x20] sm:$0xff] }
 0x276   :  { %v2351_v9 = vadd.f32 %v5791_v29, %v2340_v6 }
 0x278   :  { %v2361_v12 = vmul.f32 0.2, %v2351_v9 }
 0x27a   :  { %v2371_v15 = vmax.f32 %v2351_v9, %v2361_v12 }
 0x27b   :  { %v2323_v37 = vpop.f32.mrf.mxu3 }
 0x27c   :  { %v2341_v11 = vadd.f32 %v2323_v37, %v2193_v8  ;;  %v2045_v38 = vpop.f32.mrf.mxu1 }
 0x27e   :  { %v2352_v54 = vadd.f32 %v5791_v29, %v2341_v11 }
 0x280   :  { %v2362_v13 = vmul.f32 0.2, %v2352_v54 }
 0x282   :  { %v2372_v18 = vmax.f32 %v2352_v54, %v2362_v13 }
 0x283   :  { %v2178_v21 = vpop.f32.mrf.mxu2 }
 0x284   :  { %v2379_v19 = vpack.c.bf16 %v2372_v18, %v2371_v15  ;;  %v2194_v24 = vadd.f32 %v2178_v21, %v2041_v22  ;;  %v2047_v50 = vpop.f32.mrf.mxu1  ;;  %v4967_v22 = vld [vmem:[%s6151_s4 + $0x38] sm:$0xff] }
 0x285   :  { %2914 = vmatpush.bf16.msra.mxu3 %v4967_v22 }
 0x286   :  { %2465 = vmatmul.bf16.gmra.mxu0 %v2379_v19 }
 0x28b   :  { %v2180_v17 = vpop.f32.mrf.mxu2 }
 0x28c   :  { %v2195_v30 = vadd.f32 %v2180_v17, %v2043_v35  ;;  %v1933_v48 = vpop.f32.mrf.mxu0  ;;  %v4987_v17 = vld [vmem:[%s6151_s4 + $0xd8] sm:$0xff] }
 0x28d   :  { %v2046_v40 = vadd.f32 %v2045_v38, %v1933_v48  ;;  %v5027_v35 = vld [vmem:[%s6151_s4 + $0x218] sm:$0xff]  ;;  %2752 = vmatpush.bf16.msrb.mxu1 %v4987_v17  ;;  %v5025_v38 = vld [vmem:[%s6151_s4 + $0x208] sm:$0xff] }
 0x28e   :  { %3347 = vmatpush.bf16.msra.mxu0 %v5027_v35  ;;  %v4963_v48 = vld [vmem:[%s6151_s4 + $0x18] sm:$0xff]  ;;  %v4989_v35 = vld [vmem:[%s6151_s4 + $0xe8] sm:$0xff] }
 0x28f   :  { %v4975_v17 = vld [vmem:[%s6151_s4 + $0x78] sm:$0xff] }
 0x293   :  { %v2326_v27 = vpop.f32.mrf.mxu3 }
 0x294   :  { %v2342_v26 = vadd.f32 %v2326_v27, %v2194_v24  ;;  %v1935_v55 = vpop.f32.mrf.mxu0  ;;  %v4966_v27 = vld [vmem:[%s6151_s4 + $0x30] sm:$0xff]  ;;  %v4965_v24 = vld [vmem:[%s6151_s4 + $0x28] sm:$0xff] }
 0x295   :  { %v2048_v51 = vadd.f32 %v2047_v50, %v1935_v55  ;;  %2915 = vmatpush.bf16.msra.mxu3 %v4966_v27  ;;  %v5023_v55 = vld [vmem:[%s6151_s4 + $0x1f8] sm:$0xff] }
 0x296   :  { %v2353_v31 = vadd.f32 %v5791_v29, %v2342_v26 }
 0x298   :  { %v2363_v34 = vmul.f32 0.2, %v2353_v31 }
 0x299   :  { %2916 = vmatpush.bf16.msra.mxu3 %v4965_v24 }
 0x29a   :  { %v2373_v41 = vmax.f32 %v2353_v31, %v2363_v34  ;;  %v4986_v31 = vld [vmem:[%s6151_s4 + $0xd0] sm:$0xff]  ;;  %v4985_v34 = vld [vmem:[%s6151_s4 + $0xc8] sm:$0xff] }
 0x29b   :  { %v2328_v32 = vpop.f32.mrf.mxu3  ;;  %2753 = vmatpush.bf16.msrb.mxu1 %v4986_v31 }
 0x29c   :  { %v2343_v33 = vadd.f32 %v2328_v32, %v2195_v30  ;;  %v5026_v32 = vld [vmem:[%s6151_s4 + $0x210] sm:$0xff] }
 0x29d   :  { %2917 = vmatpush.bf16.msra.mxu3 %v4964_v28  ;;  %3348 = vmatpush.bf16.msra.mxu0 %v5026_v32  ;;  %v5052_v32 = vld [vmem:[%s6151_s4 + $0x2e0] sm:$0xff] }
 0x29e   :  { %v2354_v36 = vadd.f32 %v5791_v29, %v2343_v33 }
 0x29f   :  { %2754 = vmatpush.bf16.msrb.mxu1 %v4985_v34  ;;  %v4988_v34 = vld [vmem:[%s6151_s4 + $0xe0] sm:$0xff] }
 0x2a0   :  { %v2364_v39 = vmul.f32 0.2, %v2354_v36 }
 0x2a1   :  { %2918 = vmatpush.bf16.msra.mxu3 %v4963_v48  ;;  %3349 = vmatpush.bf16.msra.mxu0 %v5025_v38  ;;  %v4974_v48 = vld [vmem:[%s6151_s4 + $0x70] sm:$0xff]  ;;  %v5033_v38 = vld [vmem:[%s6151_s4 + $0x248] sm:$0xff] }
 0x2a2   :  { %v2374_v42 = vmax.f32 %v2354_v36, %v2364_v39  ;;  %v2183_v44 = vpop.f32.mrf.mxu2 }
 0x2a3   :  { %v2331_v45 = vpop.f32.mrf.mxu3  ;;  %v2196_v46 = vadd.f32 %v2183_v44, %v2046_v40  ;;  %v4962_v40 = vld [vmem:[%s6151_s4 + $0x10] sm:$0xff]  ;;  %v5024_v44 = vld [vmem:[%s6151_s4 + $0x200] sm:$0xff] }
 0x2a4   :  { %v2380_v47 = vpack.c.bf16 %v2374_v42, %v2373_v41  ;;  %v4984_v42 = vld [vmem:[%s6151_s4 + $0xc0] sm:$0xff] }
 0x2a5   :  { %v2344_v49 = vadd.f32 %v2331_v45, %v2196_v46  ;;  %2919 = vmatpush.bf16.msra.mxu3 %v4962_v40  ;;  %v4961_v46 = vld [vmem:[%s6151_s4 + $0x8] sm:$0xff]  ;;  %2755 = vmatpush.bf16.msrb.mxu1 %v4984_v42  ;;  %v5032_v42 = vld [vmem:[%s6151_s4 + $0x240] sm:$0xff] }
 0x2a6   :  { %2470 = vmatmul.bf16.gmra.mxu0 %v2380_v47  ;;  %v4983_v47 = vld [vmem:[%s6151_s4 + $0xb8] sm:$0xff]  ;;  %v4973_v40 = vld [vmem:[%s6151_s4 + $0x68] sm:$0xff] }
 0x2a7   :  { %v2355_v14 = vadd.f32 %v5791_v29, %v2344_v49  ;;  %3350 = vmatpush.bf16.msra.mxu0 %v5024_v44  ;;  %v4960_v49 = vld [vmem:[%s6151_s4] sm:$0xff] }
 0x2a9   :  { %v2365_v57 = vmul.f32 0.2, %v2355_v14  ;;  %2920 = vmatpush.bf16.msra.mxu3 %v4961_v46  ;;  %2756 = vmatpush.bf16.msrb.mxu1 %v4983_v47  ;;  %v5031_v47 = vld [vmem:[%s6151_s4 + $0x238] sm:$0xff] }
 0x2aa   :  { %v2185_v52 = vpop.f32.mrf.mxu2 }
 0x2ab   :  { %v2333_v53 = vpop.f32.mrf.mxu3  ;;  %v2197_v61 = vadd.f32 %v2185_v52, %v2048_v51  ;;  %v2375_v60 = vmax.f32 %v2355_v14, %v2365_v57  ;;  %v5007_v51 = vld [vmem:[%s6151_s4 + $0x178] sm:$0xff]  ;;  %3351 = vmatpush.bf16.msra.mxu0 %v5023_v55  ;;  %v5006_v14 = vld [vmem:[%s6151_s4 + $0x170] sm:$0xff] }
 0x2ac   :  { %v4982_v57 = vld [vmem:[%s6151_s4 + $0xb0] sm:$0xff] }
 0x2ad   :  { %v2345_v56 = vadd.f32 %v2333_v53, %v2197_v61  ;;  %2921 = vmatpush.bf16.msra.mxu3 %v4960_v49  ;;  %2757 = vmatpush.bf16.msrb.mxu1 %v4982_v57  ;;  %v4971_v49 = vld [vmem:[%s6151_s4 + $0x58] sm:$0xff]  ;;  %v4977_v57 = vld [vmem:[%s6151_s4 + $0x88] sm:$0xff] }
 0x2af   :  { %v2356_v58 = vadd.f32 %v5791_v29, %v2345_v56 }
 0x2b1   :  { %v2366_v59 = vmul.f32 0.2, %v2356_v58  ;;  %3130 = vmatpush.bf16.msrb.mxu3 %v5007_v51  ;;  %v4970_v51 = vld [vmem:[%s6151_s4 + $0x50] sm:$0xff] }
 0x2b3   :  { %v2376_v63 = vmax.f32 %v2356_v58, %v2366_v59  ;;  %v5022_v58 = vld [vmem:[%s6151_s4 + $0x1f0] sm:$0xff]  ;;  %v5005_v59 = vld [vmem:[%s6151_s4 + $0x168] sm:$0xff] }
 0x2b4   :  { %3352 = vmatpush.bf16.msra.mxu0 %v5022_v58  ;;  %v5050_v58 = vld [vmem:[%s6151_s4 + $0x2d0] sm:$0xff] }
 0x2b5   :  { %v2381_v0 = vpack.c.bf16 %v2376_v63, %v2375_v60  ;;  %3131 = vmatpush.bf16.msrb.mxu3 %v5006_v14  ;;  %v4981_v63 = vld [vmem:[%s6151_s4 + $0xa8] sm:$0xff] }
 0x2b6   :  { %2758 = vmatpush.bf16.msrb.mxu1 %v4981_v63  ;;  %v4969_v14 = vld [vmem:[%s6151_s4 + $0x48] sm:$0xff]  ;;  %v4976_v63 = vld [vmem:[%s6151_s4 + $0x80] sm:$0xff] }
 0x2b7   :  { %2475 = vmatmul.bf16.gmra.mxu0 %v2381_v0  ;;  %v5021_v0 = vld [vmem:[%s6151_s4 + $0x1e8] sm:$0xff] }
 0x2b8   :  { %3353 = vmatpush.bf16.msra.mxu0 %v5021_v0  ;;  %v5019_v0 = vld [vmem:[%s6151_s4 + $0x1d8] sm:$0xff] }
 0x2b9   :  { %3132 = vmatpush.bf16.msrb.mxu3 %v5005_v59  ;;  %v4968_v59 = vld [vmem:[%s6151_s4 + $0x40] sm:$0xff] }
 0x2c3   :  { %v2456_v2 = vpop.f32.mrf.mxu0 }
 0x2c4   :  { %v2457_v3 = vadd.f32 %v5806_v1, %v2456_v2 }
 0x2c6   :  { %v2481_v10 = vmul.f32 0.2, %v2457_v3 }
 0x2c8   :  { %v2491_v4 = vmax.f32 %v2457_v3, %v2481_v10  ;;  %v5004_v3 = vld [vmem:[%s6151_s4 + $0x160] sm:$0xff] }
 0x2c9   :  { %3133 = vmatpush.bf16.msrb.mxu3 %v5004_v3  ;;  %v5018_v3 = vld [vmem:[%s6151_s4 + $0x1d0] sm:$0xff] }
 0x2ca   :  { %2502 = vst.msk [vmem:[#allocation4] sm:$0xff] %vm2501_vm1, %v2491_v4  ;;  %v4980_v4 = vld [vmem:[%s6151_s4 + $0xa0] sm:$0xff] }
 0x2cb   :  { %v2458_v23 = vpop.f32.mrf.mxu0  ;;  %2759 = vmatpush.bf16.msrb.mxu1 %v4980_v4  ;;  %v5016_v4 = vld [vmem:[%s6151_s4 + $0x1c0] sm:$0xff] }
 0x2cc   :  { %v2459_v29 = vadd.f32 %v5806_v1, %v2458_v23  ;;  %v5020_v23 = vld [vmem:[%s6151_s4 + $0x1e0] sm:$0xff] }
 0x2cd   :  { %3354 = vmatpush.bf16.msra.mxu0 %v5020_v23 }
 0x2ce   :  { %v2482_v5 = vmul.f32 0.2, %v2459_v29 }
 0x2d0   :  { %v2492_v6 = vmax.f32 %v2459_v29, %v2482_v5  ;;  %v5003_v29 = vld [vmem:[%s6151_s4 + $0x158] sm:$0xff] }
 0x2d1   :  { %3134 = vmatpush.bf16.msrb.mxu3 %v5003_v29  ;;  %v4999_v5 = vld [vmem:[%s6151_s4 + $0x138] sm:$0xff] }
 0x2d2   :  { %2503 = vst.msk [vmem:[#allocation4 + $0x18] sm:$0xff] %vm2501_vm1, %v2492_v6  ;;  %v5002_v6 = vld [vmem:[%s6151_s4 + $0x150] sm:$0xff]  ;;  %2782 = vmatpush.bf16.msra.mxu1 %v4999_v5  ;;  %v5039_v29 = vld [vmem:[%s6151_s4 + $0x278] sm:$0xff] }
 0x2d5   :  { %3135 = vmatpush.bf16.msrb.mxu3 %v5002_v6 }
 0x2e3   :  { %v2461_v62 = vpop.f32.mrf.mxu0 }
 0x2e4   :  { %v2462_v16 = vadd.f32 %v5806_v1, %v2461_v62  ;;  %v4994_v62 = vld [vmem:[%s6151_s4 + $0x110] sm:$0xff] }
 0x2e6   :  { %v2483_v7 = vmul.f32 0.2, %v2462_v16 }
 0x2e8   :  { %v2493_v8 = vmax.f32 %v2462_v16, %v2483_v7  ;;  %v4998_v16 = vld [vmem:[%s6151_s4 + $0x130] sm:$0xff]  ;;  %v5001_v7 = vld [vmem:[%s6151_s4 + $0x148] sm:$0xff] }
 0x2e9   :  { %2783 = vmatpush.bf16.msra.mxu1 %v4998_v16  ;;  %3136 = vmatpush.bf16.msrb.mxu3 %v5001_v7 }
 0x2ea   :  { %2506 = vrot.lane.b32.xlu0 %v2493_v8, %s5247_s23  ;;  %v4997_v8 = vld [vmem:[%s6151_s4 + $0x128] sm:$0xff] }
 0x2eb   :  { %v2463_v9 = vpop.f32.mrf.mxu0 }
 0x2ec   :  { %v2464_v37 = vadd.f32 %v5806_v1, %v2463_v9  ;;  %v5000_v9 = vld [vmem:[%s6151_s4 + $0x140] sm:$0xff] }
 0x2ed   :  { %2784 = vmatpush.bf16.msra.mxu1 %v4997_v8  ;;  %3137 = vmatpush.bf16.msrb.mxu3 %v5000_v9 }
 0x2ee   :  { %v2484_v11 = vmul.f32 0.2, %v2464_v37 }
 0x2f0   :  { %v2494_v12 = vmax.f32 %v2464_v37, %v2484_v11  ;;  %v4996_v37 = vld [vmem:[%s6151_s4 + $0x120] sm:$0xff]  ;;  %v4993_v11 = vld [vmem:[%s6151_s4 + $0x108] sm:$0xff] }
 0x2f1   :  { %2785 = vmatpush.bf16.msra.mxu1 %v4996_v37  ;;  %v5015_v37 = vld [vmem:[%s6151_s4 + $0x1b8] sm:$0xff] }
 0x2f2   :  { %2508 = vrot.lane.b32.xlu1 %v2494_v12, %s5247_s23  ;;  %v4992_v12 = vld [vmem:[%s6151_s4 + $0x100] sm:$0xff] }
 0x303   :  { %v2466_v54 = vpop.f32.mrf.mxu0 }
 0x304   :  { %v2467_v13 = vadd.f32 %v5806_v1, %v2466_v54  ;;  %v5055_v54 = vld [vmem:[%s6151_s4 + $0x2f8] sm:$0xff] }
 0x305   :  { %3569 = vmatpush.bf16.msrb.mxu0 %v5055_v54  ;;  %v5038_v54 = vld [vmem:[%s6151_s4 + $0x270] sm:$0xff] }
 0x306   :  { %v2485_v15 = vmul.f32 0.2, %v2467_v13 }
 0x308   :  { %v2495_v18 = vmax.f32 %v2467_v13, %v2485_v15  ;;  %v4991_v15 = vld [vmem:[%s6151_s4 + $0xf8] sm:$0xff] }
 0x30a   :  { %2515 = vst.msk [vmem:[#allocation4 + $0x8] sm:$0xff] %vm2501_vm1, %v2495_v18  ;;  %v5054_v18 = vld [vmem:[%s6151_s4 + $0x2f0] sm:$0xff] }
 0x30b   :  { %v2468_v19 = vpop.f32.mrf.mxu0  ;;  %3570 = vmatpush.bf16.msrb.mxu0 %v5054_v18  ;;  %v5037_v18 = vld [vmem:[%s6151_s4 + $0x268] sm:$0xff] }
 0x30c   :  { %v2469_v20 = vadd.f32 %v5806_v1, %v2468_v19  ;;  %v4990_v19 = vld [vmem:[%s6151_s4 + $0xf0] sm:$0xff] }
 0x30e   :  { %v2486_v43 = vmul.f32 0.2, %v2469_v20 }
 0x310   :  { %v2496_v21 = vmax.f32 %v2469_v20, %v2486_v43  ;;  %v5053_v20 = vld [vmem:[%s6151_s4 + $0x2e8] sm:$0xff]  ;;  %v5035_v43 = vld [vmem:[%s6151_s4 + $0x258] sm:$0xff] }
 0x311   :  { %3571 = vmatpush.bf16.msrb.mxu0 %v5053_v20  ;;  %v5013_v20 = vld [vmem:[%s6151_s4 + $0x1a8] sm:$0xff] }
 0x312   :  { %2516 = vst.msk [vmem:[#allocation4 + $0x20] sm:$0xff] %vm2501_vm1, %v2496_v21 }
 0x315   :  { %3572 = vmatpush.bf16.msrb.mxu0 %v5052_v32  ;;  %v5009_v32 = vld [vmem:[%s6151_s4 + $0x188] sm:$0xff] }
 0x323   :  { %v2471_v25 = vpop.f32.mrf.mxu0 }
 0x324   :  { %v2472_v26 = vadd.f32 %v5806_v1, %v2471_v25 }
 0x326   :  { %v2487_v30 = vmul.f32 0.2, %v2472_v26 }
 0x328   :  { %v2497_v33 = vmax.f32 %v2472_v26, %v2487_v30 }
 0x32a   :  { %2519 = vrot.lane.b32.xlu0 %v2497_v33, %s5247_s23  ;;  %v5034_v33 = vld [vmem:[%s6151_s4 + $0x250] sm:$0xff] }
 0x32b   :  { %v2473_v36 = vpop.f32.mrf.mxu0 }
 0x32c   :  { %v2474_v39 = vadd.f32 %v5806_v1, %v2473_v36  ;;  %v4979_v36 = vld [vmem:[%s6151_s4 + $0x98] sm:$0xff] }
 0x32e   :  { %v2488_v41 = vmul.f32 0.2, %v2474_v39 }
 0x330   :  { %v2498_v45 = vmax.f32 %v2474_v39, %v2488_v41 }
 0x332   :  { %2521 = vrot.lane.b32.xlu1 %v2498_v45, %s5247_s23  ;;  %v4972_v45 = vld [vmem:[%s6151_s4 + $0x60] sm:$0xff] }
 0x334   :  { %v2476_v50 = vpop.f32.mrf.mxu0 }
 0x335   :  { %v2477_v52 = vadd.f32 %v5806_v1, %v2476_v50 }
 0x337   :  { %v2489_v53 = vmul.f32 0.2, %v2477_v52 }
 0x339   :  { %v2499_v61 = vmax.f32 %v2477_v52, %v2489_v53  ;;  %v5030_v52 = vld [vmem:[%s6151_s4 + $0x230] sm:$0xff] }
 0x33a   :  { %v4978_v53 = vld [vmem:[%s6151_s4 + $0x90] sm:$0xff] }
 0x33b   :  { %2527 = vst.msk [vmem:[#allocation4 + $0x10] sm:$0xff] %vm2501_vm1, %v2499_v61  ;;  %v5051_v61 = vld [vmem:[%s6151_s4 + $0x2d8] sm:$0xff] }
 0x33c   :  { %v2478_v56 = vpop.f32.mrf.mxu0  ;;  %3573 = vmatpush.bf16.msrb.mxu0 %v5051_v61 }
 0x33d   :  { %v2479_v60 = vadd.f32 %v5806_v1, %v2478_v56  ;;  %v4995_v1 = vld [vmem:[%s6151_s4 + $0x118] sm:$0xff]  ;;  %v5029_v56 = vld [vmem:[%s6151_s4 + $0x228] sm:$0xff] }
 0x33e   :  { %2765 = vmatpush.bf16.msra.mxu2 %v4995_v1  ;;  %v5017_v1 = vld [vmem:[%s6151_s4 + $0x1c8] sm:$0xff] }
 0x33f   :  { %v2490_v2 = vmul.f32 0.2, %v2479_v60 }
 0x340   :  { %3574 = vmatpush.bf16.msrb.mxu0 %v5050_v58 }
 0x341   :  { %v2500_v10 = vmax.f32 %v2479_v60, %v2490_v2  ;;  %v5028_v60 = vld [vmem:[%s6151_s4 + $0x220] sm:$0xff]  ;;  %v5049_v2 = vld [vmem:[%s6151_s4 + $0x2c8] sm:$0xff] }
 0x342   :  { %2766 = vmatpush.bf16.msra.mxu2 %v4994_v62  ;;  %v2577_v41 = vld [vmem:[#allocation4 + $0x10] sm:$0xc] }
 0x343   :  { %2528 = vst.msk [vmem:[#allocation4 + $0x28] sm:$0xff] %vm2501_vm1, %v2500_v10  ;;  %v2580_v46 = vpack.c.bf16 %v2577_v41, %v2577_v41  ;;  %v5048_v10 = vld [vmem:[%s6151_s4 + $0x2c0] sm:$0xff] }
 0x344   :  { %3575 = vmatpush.bf16.msrb.mxu0 %v5049_v2 }
 0x345   :  { %v2626_v50 = vrot.slane %v2580_v46, 1  ;;  %v5044_v46 = vld [vmem:[%s6151_s4 + $0x2a0] sm:$0xff] }
 0x346   :  { %2767 = vmatpush.bf16.msra.mxu2 %v4993_v11 }
 0x348   :  { %3576 = vmatpush.bf16.msrb.mxu0 %v5048_v10 }
 0x34a   :  { %2768 = vmatpush.bf16.msra.mxu2 %v4992_v12 }
 0x34e   :  { %2769 = vmatpush.bf16.msra.mxu2 %v4991_v15 }
 0x352   :  { %2770 = vmatpush.bf16.msra.mxu2 %v4990_v19 }
 0x356   :  { %2771 = vmatpush.bf16.msra.mxu2 %v4989_v35  ;;  %v5058_v35 = vld [vmem:[%s6151_s4 + $0x310] sm:$0xff] }
 0x35a   :  { %2772 = vmatpush.bf16.msra.mxu2 %v4988_v34  ;;  %v5056_v34 = vld [vmem:[%s6151_s4 + $0x300] sm:$0xff] }
 0x35c   :  { %v2507_v13 = vpop.permute.xlu0 %2506 }
 0x35d   :  { %2513 = vst.msk [vmem:[#allocation4] sm:$0xff] %vm2512_vm2, %v2507_v13  ;;  %v5014_v13 = vld [vmem:[%s6151_s4 + $0x1b0] sm:$0xff] }
 0x35e   :  { %2944 = vmatpush.bf16.msrb.mxu2 %v4979_v36 }
 0x362   :  { %2945 = vmatpush.bf16.msrb.mxu2 %v4978_v53 }
 0x364   :  { %v2509_v21 = vpop.permute.xlu1 %2508  ;;  %v2529_v22 = vld [vmem:[#allocation4] sm:$0x3]  ;;  %v2575_v27 = vld [vmem:[#allocation4] sm:$0xc]  ;;  %v3170_v24 = vld [vmem:[#allocation4] sm:$0xc0] }
 0x365   :  { %2514 = vst.msk [vmem:[#allocation4 + $0x18] sm:$0xff] %vm2512_vm2, %v2509_v21  ;;  %v2532_v25 = vpack.c.bf16 %v2529_v22, %v2529_v22  ;;  %v2578_v26 = vpack.c.bf16 %v2575_v27, %v2575_v27  ;;  %v3173_v28 = vpack.c.bf16 %v3170_v24, %v3170_v24  ;;  %v2953_v39 = vld [vmem:[#allocation4] sm:$0x30]  ;;  %v2531_v24 = vld [vmem:[#allocation4 + $0x10] sm:$0x3] }
 0x366   :  { %v2956_v44 = vpack.c.bf16 %v2953_v39, %v2953_v39  ;;  %2946 = vmatpush.bf16.msrb.mxu2 %v4977_v57  ;;  %v5036_v21 = vld [vmem:[%s6151_s4 + $0x260] sm:$0xff]  ;;  %v5047_v39 = vld [vmem:[%s6151_s4 + $0x2b8] sm:$0xff] }
 0x367   :  { %2922 = vmatmul.bf16.vlgmr.msra.gmra.mxu3 %v2532_v25  ;;  %v2624_v30 = vrot.slane %v2578_v26, 1  ;;  %v3219_v31 = vrot.slane %v3173_v28, 3  ;;  %v5012_v27 = vld [vmem:[%s6151_s4 + $0x1a0] sm:$0xff]  ;;  %v5059_v25 = vld [vmem:[%s6151_s4 + $0x318] sm:$0xff] }
 0x368   :  { %3360 = vmatpush.bf16.msra.mxu3 %v5035_v43  ;;  %v3002_v55 = vrot.slane %v2956_v44, 2  ;;  %v2955_v43 = vld [vmem:[#allocation4 + $0x10] sm:$0x30]  ;;  %v5011_v28 = vld [vmem:[%s6151_s4 + $0x198] sm:$0xff] }
 0x369   :  { %2760 = vmatmul.bf16.vlgmr.msrb.gmra.mxu1 %v2624_v30  ;;  %3355 = vmatmul.bf16.vlgmr.msra.gmra.mxu0 %v3219_v31  ;;  %v2958_v22 = vpack.c.bf16 %v2955_v43, %v2955_v43  ;;  %v5010_v30 = vld [vmem:[%s6151_s4 + $0x190] sm:$0xff]  ;;  %v5057_v31 = vld [vmem:[%s6151_s4 + $0x308] sm:$0xff] }
 0x36a   :  { %2927 = vmatpush.bf16.msrb.mxu1 %v4975_v17  ;;  %2947 = vmatpush.bf16.msrb.mxu2 %v4976_v63  ;;  %v2534_v17 = vpack.c.bf16 %v2531_v24, %v2531_v24  ;;  %v5046_v44 = vld [vmem:[%s6151_s4 + $0x2b0] sm:$0xff]  ;;  %v5248_v24 = vmov 0.0  }
 0x36b   :  { %v3004_v26 = vrot.slane %v2958_v22, 2  ;;  %3598 = vst [vmem:[%s6152_s6] sm:$0xff] %v5248_v24 }
 0x36c   :  { %3361 = vmatpush.bf16.msra.mxu3 %v5034_v33  ;;  %v3172_v33 = vld [vmem:[#allocation4 + $0x10] sm:$0xc0]  ;;  %v3387_v53 = vld [vmem:[#allocation4 + $0x18] sm:$0x3] }
 0x36d   :  { %v3175_v36 = vpack.c.bf16 %v3172_v33, %v3172_v33 }
 0x36e   :  { %2928 = vmatpush.bf16.msrb.mxu1 %v4974_v48 }
 0x36f   :  { %v3221_v41 = vrot.slane %v3175_v36, 3 }
 0x370   :  { %3362 = vmatpush.bf16.msra.mxu3 %v5033_v38  ;;  %v5008_v38 = vld [vmem:[%s6151_s4 + $0x180] sm:$0xff] }
 0x372   :  { %2929 = vmatpush.bf16.msrb.mxu1 %v4973_v40 }
 0x374   :  { %3363 = vmatpush.bf16.msra.mxu3 %v5032_v42 }
 0x376   :  { %2930 = vmatpush.bf16.msrb.mxu1 %v4972_v45  ;;  %v5045_v45 = vld [vmem:[%s6151_s4 + $0x2a8] sm:$0xff] }
 0x377   :  { %3138 = vmatmul.bf16.vlgmr.msrb.gmra.mxu3 %v3002_v55  ;;  %v5043_v55 = vld [vmem:[%s6151_s4 + $0x298] sm:$0xff] }
 0x378   :  { %3364 = vmatpush.bf16.msra.mxu3 %v5031_v47  ;;  %v3389_v47 = vld [vmem:[#allocation4 + $0x28] sm:$0x3] }
 0x379   :  { %4449 = vmatmul.msk.bf16.vlgmr.msra.gmra.mxu1 %vm2501_vm1, %v2626_v50  ;;  %v5042_v50 = vld [vmem:[%s6151_s4 + $0x290] sm:$0xff] }
 0x37a   :  { %2931 = vmatpush.bf16.msrb.mxu1 %v4971_v49  ;;  %v3392_v49 = vpack.c.bf16 %v3389_v47, %v3389_v47 }
 0x37c   :  { %3365 = vmatpush.bf16.msra.mxu3 %v5030_v52  ;;  %v5040_v52 = vld [vmem:[%s6151_s4 + $0x280] sm:$0xff] }
 0x37e   :  { %2932 = vmatpush.bf16.msrb.mxu1 %v4970_v51  ;;  %v5041_v51 = vld [vmem:[%s6151_s4 + $0x288] sm:$0xff] }
 0x380   :  { %3366 = vmatpush.bf16.msra.mxu3 %v5029_v56 }
 0x382   :  { %2933 = vmatpush.bf16.msrb.mxu1 %v4969_v14  ;;  %v3390_v14 = vpack.c.bf16 %v3387_v53, %v3387_v53 }
 0x384   :  { %3367 = vmatpush.bf16.msra.mxu3 %v5028_v60 }
 0x386   :  { %2934 = vmatpush.bf16.msrb.mxu1 %v4968_v59 }
 0x38a   :  { %3160 = vmatpush.bf16.msra.mxu1 %v5019_v0 }
 0x38e   :  { %3161 = vmatpush.bf16.msra.mxu1 %v5018_v3 }
 0x392   :  { %3162 = vmatpush.bf16.msra.mxu1 %v5017_v1 }
 0x396   :  { %3163 = vmatpush.bf16.msra.mxu1 %v5016_v4 }
 0x39c   :  { %v2520_v23 = vpop.permute.xlu0 %2519 }
 0x39d   :  { %2525 = vst.msk [vmem:[#allocation4 + $0x8] sm:$0xff] %vm2512_vm2, %v2520_v23 }
 0x3a4   :  { %v2522_v5 = vpop.permute.xlu1 %2521  ;;  %v2530_v6 = vld [vmem:[#allocation4 + $0x8] sm:$0x3]  ;;  %v2576_v62 = vld [vmem:[#allocation4 + $0x8] sm:$0xc]  ;;  %v3171_v16 = vld [vmem:[#allocation4 + $0x8] sm:$0xc0] }
 0x3a5   :  { %2526 = vst.msk [vmem:[#allocation4 + $0x20] sm:$0xff] %vm2512_vm2, %v2522_v5  ;;  %v2533_v7 = vpack.c.bf16 %v2530_v6, %v2530_v6  ;;  %v2579_v8 = vpack.c.bf16 %v2576_v62, %v2576_v62  ;;  %v3174_v9 = vpack.c.bf16 %v3171_v16, %v3171_v16  ;;  %v2954_v48 = vld [vmem:[#allocation4 + $0x8] sm:$0x30] }
 0x3a6   :  { %v2957_v40 = vpack.c.bf16 %v2954_v48, %v2954_v48 }
 0x3a7   :  { %2935 = vmatmul.bf16.vlgmr.msrb.gmra.mxu1 %v2533_v7  ;;  %v2625_v11 = vrot.slane %v2579_v8, 1  ;;  %v3220_v12 = vrot.slane %v3174_v9, 3 }
 0x3a8   :  { %3377 = vmatpush.bf16.msrb.mxu1 %v5039_v29  ;;  %v3003_v42 = vrot.slane %v2957_v40, 2 }
 0x3a9   :  { %2773 = vmatmul.bf16.vlgmr.msra.gmra.mxu2 %v2625_v11  ;;  %3368 = vmatmul.bf16.vlgmr.msra.gmra.mxu3 %v3220_v12 }
 0x3aa   :  { %3143 = vmatpush.bf16.msra.mxu2 %v5015_v37 }
 0x3ac   :  { %v3388_v15 = vld [vmem:[#allocation4 + $0x20] sm:$0x3]  ;;  %3378 = vmatpush.bf16.msrb.mxu1 %v5038_v54 }
 0x3ad   :  { %v3391_v19 = vpack.c.bf16 %v3388_v15, %v3388_v15 }
 0x3ae   :  { %3144 = vmatpush.bf16.msra.mxu2 %v5014_v13 }
 0x3af   :  { %3577 = vmatmul.bf16.vlgmr.msrb.gmra.mxu0 %v3391_v19 }
 0x3b0   :  { %3379 = vmatpush.bf16.msrb.mxu1 %v5037_v18 }
 0x3b2   :  { %3145 = vmatpush.bf16.msra.mxu2 %v5013_v20 }
 0x3b4   :  { %3380 = vmatpush.bf16.msrb.mxu1 %v5036_v21 }
 0x3b6   :  { %3146 = vmatpush.bf16.msra.mxu2 %v5012_v27 }
 0x3b7   :  { %4611 = vmatmul.msk.bf16.vlgmr.msra.gmra.mxu1 %vm2501_vm1, %v3004_v26 }
 0x3b8   :  { %3586 = vmatpush.bf16.msra.mxu1 %v5059_v25 }
 0x3b9   :  { %4530 = vmatmul.msk.bf16.vlgmr.msrb.gmra.mxu2 %vm2501_vm1, %v2534_v17 }
 0x3ba   :  { %3147 = vmatpush.bf16.msra.mxu2 %v5011_v28 }
 0x3bc   :  { %3587 = vmatpush.bf16.msra.mxu1 %v5058_v35 }
 0x3be   :  { %3148 = vmatpush.bf16.msra.mxu2 %v5010_v30 }
 0x3c0   :  { %3588 = vmatpush.bf16.msra.mxu1 %v5057_v31 }
 0x3c2   :  { %3149 = vmatpush.bf16.msra.mxu2 %v5009_v32  ;;  %v5245_v32 = vld [vmem:[%s6147_s5 + $0x4] ss:$0 sm:$0xff] }
 0x3c4   :  { %3589 = vmatpush.bf16.msra.mxu1 %v5056_v34 }
 0x3c6   :  { %3150 = vmatpush.bf16.msra.mxu2 %v5008_v38 }
 0x3c7   :  { %4692 = vmatmul.msk.bf16.vlgmr.msrb.gmra.mxu1 %vm2501_vm1, %v3221_v41 }
 0x3c9   :  { %3151 = vmatmul.bf16.vlgmr.msra.gmra.mxu2 %v3003_v42 }
 0x3ca   :  { %3556 = vmatpush.bf16.msrb.mxu2 %v5047_v39 }
 0x3ce   :  { %3557 = vmatpush.bf16.msrb.mxu2 %v5046_v44 }
 0x3d2   :  { %3558 = vmatpush.bf16.msrb.mxu2 %v5045_v45 }
 0x3d6   :  { %3559 = vmatpush.bf16.msrb.mxu2 %v5044_v46 }
 0x3d7   :  { %4773 = vmatmul.msk.bf16.vlgmr.msra.gmra.mxu1 %vm2501_vm1, %v3392_v49 }
 0x3da   :  { %3560 = vmatpush.bf16.msrb.mxu2 %v5043_v55 }
 0x3de   :  { %3561 = vmatpush.bf16.msrb.mxu2 %v5042_v50 }
 0x3e2   :  { %3562 = vmatpush.bf16.msrb.mxu2 %v5041_v51 }
 0x3e6   :  { %3563 = vmatpush.bf16.msrb.mxu2 %v5040_v52  ;;  %v2761_v61 = vpop.f32.mrf.mxu1  ;;  %v3356_v56 = vpop.f32.mrf.mxu0 }
 0x3e9   :  { %3564 = vmatmul.bf16.vlgmr.msrb.gmra.mxu2 %v3390_v14 }
 0x3ea   :  { %v2923_v57 = vpop.f32.mrf.mxu3 }
 0x3ee   :  { %v2763_v58 = vpop.f32.mrf.mxu1  ;;  %v3358_v59 = vpop.f32.mrf.mxu0 }
 0x3f2   :  { %v2925_v60 = vpop.f32.mrf.mxu3 }
 0x3f6   :  { %v2787_v63 = vpop.f32.mrf.mxu1 }
 0x3fa   :  { %v3139_v0 = vpop.f32.mrf.mxu3 }
 0x3fe   :  { %v2789_v2 = vpop.f32.mrf.mxu1 }
 0x402   :  { %v3141_v3 = vpop.f32.mrf.mxu3 }
 0x424   :  { %v2936_v10 = vpop.f32.mrf.mxu1 }
 0x42c   :  { %v2774_v1 = vpop.f32.mrf.mxu2  ;;  %v2938_v4 = vpop.f32.mrf.mxu1 }
 0x42d   :  { %v2775_v23 = vadd.f32 %v2774_v1, %v2761_v61  ;;  %v3369_v29 = vpop.f32.mrf.mxu3  ;;  %v3578_v5 = vpop.f32.mrf.mxu0 }
 0x42e   :  { %v3370_v20 = vadd.f32 %v3369_v29, %v3356_v56 }
 0x42f   :  { %v2788_v6 = vadd.f32 %v2787_v63, %v2775_v23 }
 0x431   :  { %v2924_v62 = vadd.f32 %v2923_v57, %v2788_v6 }
 0x433   :  { %v2937_v16 = vadd.f32 %v2936_v10, %v2924_v62 }
 0x434   :  { %v2776_v7 = vpop.f32.mrf.mxu2  ;;  %v3165_v8 = vpop.f32.mrf.mxu1 }
 0x435   :  { %v3371_v9 = vpop.f32.mrf.mxu3  ;;  %v3580_v37 = vpop.f32.mrf.mxu0 }
 0x43c   :  { %v2949_v11 = vpop.f32.mrf.mxu2  ;;  %v3167_v12 = vpop.f32.mrf.mxu1 }
 0x43d   :  { %v2950_v43 = vadd.f32 %v2949_v11, %v2937_v16 }
 0x444   :  { %v2951_v54 = vpop.f32.mrf.mxu2  ;;  %v3382_v13 = vpop.f32.mrf.mxu1 }
 0x445   :  { %v3383_v22 = vadd.f32 %v3382_v13, %v3370_v20 }
 0x44c   :  { %v3152_v15 = vpop.f32.mrf.mxu2  ;;  %v3384_v18 = vpop.f32.mrf.mxu1 }
 0x44d   :  { %v3153_v19 = vadd.f32 %v3152_v15, %v3139_v0 }
 0x44f   :  { %v3166_v21 = vadd.f32 %v3165_v8, %v3153_v19 }
 0x451   :  { %v3169_v27 = vadd.f32 %v3166_v21, %v2950_v43 }
 0x453   :  { %v3386_v25 = vadd.f32 %v3383_v22, %v3169_v27 }
 0x454   :  { %v3154_v26 = vpop.f32.mrf.mxu2  ;;  %v3591_v28 = vpop.f32.mrf.mxu1 }
 0x45c   :  { %v3593_v17 = vpop.f32.mrf.mxu1 }
 0x46c   :  { %v3565_v35 = vpop.f32.mrf.mxu2 }
 0x46d   :  { %v3579_v30 = vadd.f32 %v3578_v5, %v3565_v35 }
 0x46f   :  { %v3592_v31 = vadd.f32 %v3591_v28, %v3579_v30 }
 0x471   :  { %v3595_v33 = vadd.f32 %v3592_v31, %v3386_v25 }
 0x473   :  { %v3597_v48 = vadd.f32 %v5245_v32, %v3595_v33 }
 0x474   :  { %v3567_v34 = vpop.f32.mrf.mxu2 }
 0x475   :  { %3600 = vst.msk [vmem:[%s6152_s6] sm:$0x3] %vm3599_vm3, %v3597_v48 }

</bundles_post_ra>
